<compile_context>
chip_gen: v7x
topology: tpu7x:2x2x1
jax: 0.10.0
libtpu: 0.0.40
codegen_flags: <defaults>
</compile_context>

<pallas_src>
import functools

import jax
import jax.numpy as jnp
from jax.experimental import pallas as pl
from jax.experimental.pallas import tpu as pltpu

# Small stand-in for PVTv2-B1 embed_dims (real ones are (64, 128, 320, 512)).
EMBED_DIMS = (16, 32, 64, 128)
OUT_DIM = 256          # nn.Linear(dim, 256)
MAX_TILE_N = 512       # token-tile cap (lane-aligned)


def _round_up(x, m):
    return ((x + m - 1) // m) * m


# ---------------------------------------------------------------------------
# Fused Pallas kernel: per (batch, token-tile) step, project one level's tile
# and write it directly into the concatenated [c5 | c4 | c3] output layout.
# ---------------------------------------------------------------------------
def _fused_kernel(x5_ref, x4_ref, x3_ref,
                  w5_ref, w4_ref, w3_ref,
                  b5_ref, b4_ref, b3_ref,
                  o_ref, *, t5, t4):
    t = pl.program_id(1)

    def proj(x_ref, w_ref, b_ref):
        # x tile is channel-major (C_l, tile); contract its channel axis with
        # the (C_l, 256) weight on the MXU (bf16 x bf16 -> f32 accumulate),
        # bias + bf16-cast epilogue, lane-dense (tile, 256) store.
        acc = jax.lax.dot_general(
            x_ref[...], w_ref[...],
            dimension_numbers=(((0,), (0,)), ((), ())),
            preferred_element_type=jnp.float32)
        o_ref[...] = (acc + b_ref[...]).astype(o_ref.dtype)

    @pl.when(t < t5)
    def _():
        proj(x5_ref, w5_ref, b5_ref)

    @pl.when(jnp.logical_and(t >= t5, t < t5 + t4))
    def _():
        proj(x4_ref, w4_ref, b4_ref)

    @pl.when(t >= t5 + t4)
    def _():
        proj(x3_ref, w3_ref, b3_ref)


def fused_mlp_concat(cm5, cm4, cm3, w5, b5, w4, b4, w3, b3):
    """Linear(c5)/Linear(c4)/Linear(c3) + torch.cat([c5,c4,c3], dim=1), fused.

    cm*: channel-major (B, C_l, N_l) token streams (== NCHW.flatten(2); the
         transpose(1,2) is folded into the kernel's contraction).
    Returns (B, N5+N4+N3, 256) in bf16 (downstream decoder dtype).
    """
    B, ch5, n5 = cm5.shape
    _, ch4, n4 = cm4.shape
    _, ch3, n3 = cm3.shape
    d = w5.shape[1]

    # Token tile: lane-aligned, 128..512 regardless of level token counts.
    tile = max(128, min(MAX_TILE_N, _round_up(max(n5, n4, n3), 128)))

    n5p, n4p, n3p = (_round_up(n, tile) for n in (n5, n4, n3))
    t5, t4, t3 = n5p // tile, n4p // tile, n3p // tile
    grid = (B, t5 + t4 + t3)

    def pad_tokens(x, n_pad):
        n = x.shape[-1]
        if n == n_pad:
            return x
        return jnp.pad(x, ((0, 0), (0, 0), (0, n_pad - n)))

    bf16 = jnp.bfloat16
    cm5, cm4, cm3 = (pad_tokens(c, p).astype(bf16)
                     for c, p in ((cm5, n5p), (cm4, n4p), (cm3, n3p)))

    # Clamped per-level token-block indices: while another level is being
    # processed the block index is pinned, so Pallas skips the redundant DMA
    # (index unchanged) and each x tile is fetched once per sequential sweep.
    x5_map = lambda b, t: (b, 0, jnp.minimum(t, t5 - 1))
    x4_map = lambda b, t: (b, 0, jnp.clip(t - t5, 0, t4 - 1))
    x3_map = lambda b, t: (b, 0, jnp.clip(t - t5 - t4, 0, t3 - 1))
    const2 = lambda b, t: (0, 0)

    kernel = functools.partial(_fused_kernel, t5=t5, t4=t4)

    flops = 2 * B * (n5p * ch5 + n4p * ch4 + n3p * ch3) * d
    bytes_accessed = (2 * B * (n5p * ch5 + n4p * ch4 + n3p * ch3)   # bf16 x
                      + 2 * (ch5 + ch4 + ch3) * d                   # bf16 W
                      + 4 * 3 * d                                   # f32 bias
                      + 2 * B * (n5p + n4p + n3p) * d)              # bf16 out

    out_padded = pl.pallas_call(
        kernel,
        out_shape=jax.ShapeDtypeStruct((B, n5p + n4p + n3p, d), bf16),
        grid=grid,
        in_specs=[
            pl.BlockSpec((None, ch5, tile), x5_map),
            pl.BlockSpec((None, ch4, tile), x4_map),
            pl.BlockSpec((None, ch3, tile), x3_map),
            pl.BlockSpec((ch5, d), const2),   # weights: fetched once, resident
            pl.BlockSpec((ch4, d), const2),
            pl.BlockSpec((ch3, d), const2),
            pl.BlockSpec((1, d), const2),     # f32 biases
            pl.BlockSpec((1, d), const2),
            pl.BlockSpec((1, d), const2),
        ],
        out_specs=pl.BlockSpec((None, tile, d), lambda b, t: (b, t, 0)),
        compiler_params=pltpu.CompilerParams(
            dimension_semantics=("parallel", "parallel")),
        cost_estimate=pl.CostEstimate(
            flops=flops, transcendentals=0, bytes_accessed=bytes_accessed),
    )(cm5, cm4, cm3,
      w5.astype(bf16), w4.astype(bf16), w3.astype(bf16),
      b5.reshape(1, d).astype(jnp.float32),
      b4.reshape(1, d).astype(jnp.float32),
      b3.reshape(1, d).astype(jnp.float32))

    if (n5p, n4p, n3p) == (n5, n4, n3):
        return out_padded            # fully fused concat, nothing to strip
    # TODO(synk): when level token counts are not tile multiples this strip is
    # one extra bf16 pass over the output; a manual element-offset output DMA
    # (memory_space=pl.ANY + pltpu.make_async_copy) could remove it entirely.
    return jnp.concatenate(
        [out_padded[:, :n5],
         out_padded[:, n5p:n5p + n4],
         out_padded[:, n5p + n4p:n5p + n4p + n3]], axis=1)


# ---------------------------------------------------------------------------
# Backbone stand-in + glue
# ---------------------------------------------------------------------------
def fake_backbone(x_nchw, proj_mats):
    # TODO(synk): PVTv2 backbone source was not provided; this deterministic
    # stand-in (strided average pooling + fixed channel projection) produces
    # c3/c4/c5 NCHW feature maps with PVTv2's stage strides (8/16/32) and
    # channel counts EMBED_DIMS[1:], so the MLP/concat semantics of
    # PanopticSegFormer.forward are exercised faithfully.
    B, C, H, W = x_nchw.shape
    feats = []
    for proj, stride in zip(proj_mats, (8, 16, 32)):
        h, w = H // stride, W // stride
        pooled = x_nchw.reshape(B, C, h, stride, w, stride).mean(axis=(3, 5))
        tokens = pooled.reshape(B, C, h * w).transpose(0, 2, 1)         # (B,N,C)
        proj_tok = tokens @ proj                                        # (B,N,E)
        feats.append(proj_tok.transpose(0, 2, 1).reshape(B, -1, h, w))  # NCHW
    return feats  # c3, c4, c5


def flatten_channels_major(c):
    # torch's x.flatten(2): (B, C, H, W) -> (B, C, H*W).  The transpose(1, 2)
    # is folded into the kernel's contraction, so no XLA transpose is emitted.
    B, C, H, W = c.shape
    return c.reshape(B, C, H * W)


def init_params(key):
    keys = jax.random.split(key, 8)
    params = {"backbone_proj": [
        jax.random.normal(keys[i], (3, EMBED_DIMS[i + 1]), jnp.float32)
        for i in range(3)
    ]}
    for i, name in zip((1, 2, 3), ("c3", "c4", "c5")):
        dim = EMBED_DIMS[i]
        params[f"w_{name}"] = (jax.random.normal(keys[3 + i], (dim, OUT_DIM),
                                                 jnp.float32) / float(dim) ** 0.5)
        params[f"b_{name}"] = 0.002 * (i + 1) * jnp.arange(OUT_DIM,
                                                           dtype=jnp.float32)
    return params


# ---------------------------------------------------------------------------
# PanopticSegFormer.forward
# ---------------------------------------------------------------------------
def panoptic_segformer_forward(x, params):
    c3, c4, c5 = fake_backbone(x, params["backbone_proj"])
    m3, m4, m5 = (flatten_channels_major(c) for c in (c3, c4, c5))
    # torch.cat([c5, c4, c3], dim=1) is fused into the kernel's output layout.
    return fused_mlp_concat(m5, m4, m3,
                            params["w_c5"], params["b_c5"],
                            params["w_c4"], params["b_c4"],
                            params["w_c3"], params["b_c3"])


def reference_forward(x, params):
    # Pure-JAX reference with the same bf16 operands + f32 accumulation.
    c3, c4, c5 = fake_backbone(x, params["backbone_proj"])

    def mlp(c, w, b):
        B, C, H, W = c.shape
        tok = c.reshape(B, C, H * W).transpose(0, 2, 1).astype(jnp.bfloat16)
        y = jnp.einsum("bnc,cd->bnd", tok, w.astype(jnp.bfloat16),
                       preferred_element_type=jnp.float32)
        return (y + b).astype(jnp.bfloat16)

    return jnp.concatenate([mlp(c5, params["w_c5"], params["b_c5"]),
                            mlp(c4, params["w_c4"], params["b_c4"]),
                            mlp(c3, params["w_c3"], params["b_c3"])], axis=1)


if __name__ == "__main__":
    key = jax.random.PRNGKey(0)
    k_x, k_p = jax.random.split(key)
    # NCHW input; H, W divisible by 32 (PVTv2 stage strides).
    x = jax.random.normal(k_x, (2, 3, 128, 128), jnp.float32)
    params = init_params(k_p)

    out = jax.block_until_ready(jax.jit(panoptic_segformer_forward)(x, params))

    n_total = (128 // 32) ** 2 + (128 // 16) ** 2 + (128 // 8) ** 2  # 16+64+256
    assert out.shape == (2, n_total, OUT_DIM), out.shape
    assert out.dtype == jnp.bfloat16, out.dtype
    assert bool(jnp.isfinite(out.astype(jnp.float32)).all())

    ref = reference_forward(x, params)
    err = float(jnp.max(jnp.abs(out.astype(jnp.float32) - ref.astype(jnp.float32))))
    assert jnp.allclose(out.astype(jnp.float32), ref.astype(jnp.float32),
                        rtol=5e-2, atol=5e-2), err

    print("KERNEL_OK")
</pallas_src>

<mosaic_0001>
module attributes {stable_mosaic.version = 11 : i64} {
  func.func @_fused_kernel(%arg0: i32, %arg1: i32, %arg2: memref<1x128x256xbf16, #tpu.memory_space<vmem>>, %arg3: memref<1x64x256xbf16, #tpu.memory_space<vmem>>, %arg4: memref<1x32x256xbf16, #tpu.memory_space<vmem>>, %arg5: memref<128x256xbf16, #tpu.memory_space<vmem>>, %arg6: memref<64x256xbf16, #tpu.memory_space<vmem>>, %arg7: memref<32x256xbf16, #tpu.memory_space<vmem>>, %arg8: memref<1x256xf32, #tpu.memory_space<vmem>>, %arg9: memref<1x256xf32, #tpu.memory_space<vmem>>, %arg10: memref<1x256xf32, #tpu.memory_space<vmem>>, %arg11: memref<1x256x256xbf16, #tpu.memory_space<vmem>>) attributes {dimension_semantics = [#tpu.dimension_semantics<parallel>, #tpu.dimension_semantics<parallel>], iteration_bounds = array<i64: 2, 3>, scalar_prefetch = 0 : i64, scratch_operands = 0 : i64, tpu.core_type = #tpu.core_type<tc>, window_params = [{transform_indices = @transform_0, window_bounds = array<i64: 1, 128, 256>}, {transform_indices = @transform_1, window_bounds = array<i64: 1, 64, 256>}, {transform_indices = @transform_2, window_bounds = array<i64: 1, 32, 256>}, {pipeline_mode = #tpu.pipeline_mode<synchronous>, transform_indices = @transform_3, window_bounds = array<i64: 128, 256>}, {pipeline_mode = #tpu.pipeline_mode<synchronous>, transform_indices = @transform_4, window_bounds = array<i64: 64, 256>}, {pipeline_mode = #tpu.pipeline_mode<synchronous>, transform_indices = @transform_5, window_bounds = array<i64: 32, 256>}, {pipeline_mode = #tpu.pipeline_mode<synchronous>, transform_indices = @transform_6, window_bounds = array<i64: 1, 256>}, {pipeline_mode = #tpu.pipeline_mode<synchronous>, transform_indices = @transform_7, window_bounds = array<i64: 1, 256>}, {pipeline_mode = #tpu.pipeline_mode<synchronous>, transform_indices = @transform_8, window_bounds = array<i64: 1, 256>}, {transform_indices = @transform_9, window_bounds = array<i64: 1, 256, 256>}]} {
    %c1_i32 = arith.constant 1 : i32
    %0 = arith.cmpi slt, %arg1, %c1_i32 : i32
    %1 = arith.extui %0 : i1 to i32
    %c0_i32 = arith.constant 0 : i32
    %2 = arith.cmpi ne, %1, %c0_i32 : i32
    scf.if %2 {
      %c0 = arith.constant 0 : index
      %c0_4 = arith.constant 0 : index
      %c0_5 = arith.constant 0 : index
      %11 = vector.load %arg2[%c0, %c0_4, %c0_5] : memref<1x128x256xbf16, #tpu.memory_space<vmem>>, vector<1x128x256xbf16>
      %12 = vector.shape_cast %11 : vector<1x128x256xbf16> to vector<128x256xbf16>
      %c0_6 = arith.constant 0 : index
      %c0_7 = arith.constant 0 : index
      %13 = vector.load %arg5[%c0_6, %c0_7] : memref<128x256xbf16, #tpu.memory_space<vmem>>, vector<128x256xbf16>
      %cst = arith.constant dense<0.000000e+00> : vector<256x256xf32>
      %14 = tpu.matmul %12, %13, %cst {dimension_numbers = #tpu.dot_dimension_numbers<[0], [0], [1], [1], [0, 1, 1, 1], [], []>} : vector<128x256xbf16>, vector<128x256xbf16>, vector<256x256xf32> -> vector<256x256xf32>
      %c0_8 = arith.constant 0 : index
      %c0_9 = arith.constant 0 : index
      %15 = vector.load %arg8[%c0_8, %c0_9] : memref<1x256xf32, #tpu.memory_space<vmem>>, vector<1x256xf32>
      %16 = vector.broadcast %15 : vector<1x256xf32> to vector<256x256xf32>
      %17 = arith.addf %14, %16 : vector<256x256xf32>
      %18 = arith.truncf %17 : vector<256x256xf32> to vector<256x256xbf16>
      %c0_10 = arith.constant 0 : index
      %c0_11 = arith.constant 0 : index
      %c0_12 = arith.constant 0 : index
      %19 = vector.load %arg11[%c0_10, %c0_11, %c0_12] : memref<1x256x256xbf16, #tpu.memory_space<vmem>>, vector<1x256x256xbf16>
      %20 = vector.shape_cast %19 : vector<1x256x256xbf16> to vector<256x256xbf16>
      %21 = vector.shape_cast %18 : vector<256x256xbf16> to vector<1x256x256xbf16>
      tpu.vector_store %arg11[%c0_10, %c0_11, %c0_12], %21 {strides = array<i32>} : memref<1x256x256xbf16, #tpu.memory_space<vmem>>, vector<1x256x256xbf16>,
    } else {
    }
    %c1_i32_0 = arith.constant 1 : i32
    %3 = arith.cmpi sge, %arg1, %c1_i32_0 : i32
    %c2_i32 = arith.constant 2 : i32
    %4 = arith.cmpi slt, %arg1, %c2_i32 : i32
    %5 = arith.andi %3, %4 : i1
    %6 = arith.extui %5 : i1 to i32
    %c0_i32_1 = arith.constant 0 : i32
    %7 = arith.cmpi ne, %6, %c0_i32_1 : i32
    scf.if %7 {
      %c0 = arith.constant 0 : index
      %c0_4 = arith.constant 0 : index
      %c0_5 = arith.constant 0 : index
      %11 = vector.load %arg3[%c0, %c0_4, %c0_5] : memref<1x64x256xbf16, #tpu.memory_space<vmem>>, vector<1x64x256xbf16>
      %12 = vector.shape_cast %11 : vector<1x64x256xbf16> to vector<64x256xbf16>
      %c0_6 = arith.constant 0 : index
      %c0_7 = arith.constant 0 : index
      %13 = vector.load %arg6[%c0_6, %c0_7] : memref<64x256xbf16, #tpu.memory_space<vmem>>, vector<64x256xbf16>
      %cst = arith.constant dense<0.000000e+00> : vector<256x256xf32>
      %14 = tpu.matmul %12, %13, %cst {dimension_numbers = #tpu.dot_dimension_numbers<[0], [0], [1], [1], [0, 1, 1, 1], [], []>} : vector<64x256xbf16>, vector<64x256xbf16>, vector<256x256xf32> -> vector<256x256xf32>
      %c0_8 = arith.constant 0 : index
      %c0_9 = arith.constant 0 : index
      %15 = vector.load %arg9[%c0_8, %c0_9] : memref<1x256xf32, #tpu.memory_space<vmem>>, vector<1x256xf32>
      %16 = vector.broadcast %15 : vector<1x256xf32> to vector<256x256xf32>
      %17 = arith.addf %14, %16 : vector<256x256xf32>
      %18 = arith.truncf %17 : vector<256x256xf32> to vector<256x256xbf16>
      %c0_10 = arith.constant 0 : index
      %c0_11 = arith.constant 0 : index
      %c0_12 = arith.constant 0 : index
      %19 = vector.load %arg11[%c0_10, %c0_11, %c0_12] : memref<1x256x256xbf16, #tpu.memory_space<vmem>>, vector<1x256x256xbf16>
      %20 = vector.shape_cast %19 : vector<1x256x256xbf16> to vector<256x256xbf16>
      %21 = vector.shape_cast %18 : vector<256x256xbf16> to vector<1x256x256xbf16>
      tpu.vector_store %arg11[%c0_10, %c0_11, %c0_12], %21 {strides = array<i32>} : memref<1x256x256xbf16, #tpu.memory_space<vmem>>, vector<1x256x256xbf16>,
    } else {
    }
    %c2_i32_2 = arith.constant 2 : i32
    %8 = arith.cmpi sge, %arg1, %c2_i32_2 : i32
    %9 = arith.extui %8 : i1 to i32
    %c0_i32_3 = arith.constant 0 : i32
    %10 = arith.cmpi ne, %9, %c0_i32_3 : i32
    scf.if %10 {
      %c0 = arith.constant 0 : index
      %c0_4 = arith.constant 0 : index
      %c0_5 = arith.constant 0 : index
      %11 = vector.load %arg4[%c0, %c0_4, %c0_5] : memref<1x32x256xbf16, #tpu.memory_space<vmem>>, vector<1x32x256xbf16>
      %12 = vector.shape_cast %11 : vector<1x32x256xbf16> to vector<32x256xbf16>
      %c0_6 = arith.constant 0 : index
      %c0_7 = arith.constant 0 : index
      %13 = vector.load %arg7[%c0_6, %c0_7] : memref<32x256xbf16, #tpu.memory_space<vmem>>, vector<32x256xbf16>
      %cst = arith.constant dense<0.000000e+00> : vector<256x256xf32>
      %14 = tpu.matmul %12, %13, %cst {dimension_numbers = #tpu.dot_dimension_numbers<[0], [0], [1], [1], [0, 1, 1, 1], [], []>} : vector<32x256xbf16>, vector<32x256xbf16>, vector<256x256xf32> -> vector<256x256xf32>
      %c0_8 = arith.constant 0 : index
      %c0_9 = arith.constant 0 : index
      %15 = vector.load %arg10[%c0_8, %c0_9] : memref<1x256xf32, #tpu.memory_space<vmem>>, vector<1x256xf32>
      %16 = vector.broadcast %15 : vector<1x256xf32> to vector<256x256xf32>
      %17 = arith.addf %14, %16 : vector<256x256xf32>
      %18 = arith.truncf %17 : vector<256x256xf32> to vector<256x256xbf16>
      %c0_10 = arith.constant 0 : index
      %c0_11 = arith.constant 0 : index
      %c0_12 = arith.constant 0 : index
      %19 = vector.load %arg11[%c0_10, %c0_11, %c0_12] : memref<1x256x256xbf16, #tpu.memory_space<vmem>>, vector<1x256x256xbf16>
      %20 = vector.shape_cast %19 : vector<1x256x256xbf16> to vector<256x256xbf16>
      %21 = vector.shape_cast %18 : vector<256x256xbf16> to vector<1x256x256xbf16>
      tpu.vector_store %arg11[%c0_10, %c0_11, %c0_12], %21 {strides = array<i32>} : memref<1x256x256xbf16, #tpu.memory_space<vmem>>, vector<1x256x256xbf16>,
    } else {
    }
    return
  }
  func.func @transform_0(%arg0: i32, %arg1: i32) -> (i32, i32, i32) {
    %c0_i32 = arith.constant 0 : i32
    %0 = arith.minsi %arg1, %c0_i32 : i32
    %c0_i32_0 = arith.constant 0 : i32
    %c0_i32_1 = arith.constant 0 : i32
    return %arg0, %c0_i32_0, %0 : i32, i32, i32
  }
  func.func @transform_1(%arg0: i32, %arg1: i32) -> (i32, i32, i32) {
    %c1_i32 = arith.constant 1 : i32
    %0 = arith.subi %arg1, %c1_i32 : i32
    %c0_i32 = arith.constant 0 : i32
    %c0_i32_0 = arith.constant 0 : i32
    %1 = arith.maxsi %c0_i32, %0 : i32
    %2 = arith.minsi %c0_i32_0, %1 : i32
    %c0_i32_1 = arith.constant 0 : i32
    %c0_i32_2 = arith.constant 0 : i32
    return %arg0, %c0_i32_1, %2 : i32, i32, i32
  }
  func.func @transform_2(%arg0: i32, %arg1: i32) -> (i32, i32, i32) {
    %c1_i32 = arith.constant 1 : i32
    %0 = arith.subi %arg1, %c1_i32 : i32
    %c1_i32_0 = arith.constant 1 : i32
    %1 = arith.subi %0, %c1_i32_0 : i32
    %c0_i32 = arith.constant 0 : i32
    %c0_i32_1 = arith.constant 0 : i32
    %2 = arith.maxsi %c0_i32, %1 : i32
    %3 = arith.minsi %c0_i32_1, %2 : i32
    %c0_i32_2 = arith.constant 0 : i32
    %c0_i32_3 = arith.constant 0 : i32
    return %arg0, %c0_i32_2, %3 : i32, i32, i32
  }
  func.func @transform_3(%arg0: i32, %arg1: i32) -> (i32, i32) {
    %c0_i32 = arith.constant 0 : i32
    %c0_i32_0 = arith.constant 0 : i32
    %c0_i32_1 = arith.constant 0 : i32
    return %c0_i32, %c0_i32_0 : i32, i32
  }
  func.func @transform_4(%arg0: i32, %arg1: i32) -> (i32, i32) {
    %c0_i32 = arith.constant 0 : i32
    %c0_i32_0 = arith.constant 0 : i32
    %c0_i32_1 = arith.constant 0 : i32
    return %c0_i32, %c0_i32_0 : i32, i32
  }
  func.func @transform_5(%arg0: i32, %arg1: i32) -> (i32, i32) {
    %c0_i32 = arith.constant 0 : i32
    %c0_i32_0 = arith.constant 0 : i32
    %c0_i32_1 = arith.constant 0 : i32
    return %c0_i32, %c0_i32_0 : i32, i32
  }
  func.func @transform_6(%arg0: i32, %arg1: i32) -> (i32, i32) {
    %c0_i32 = arith.constant 0 : i32
    %c0_i32_0 = arith.constant 0 : i32
    %c0_i32_1 = arith.constant 0 : i32
    return %c0_i32, %c0_i32_0 : i32, i32
  }
  func.func @transform_7(%arg0: i32, %arg1: i32) -> (i32, i32) {
    %c0_i32 = arith.constant 0 : i32
    %c0_i32_0 = arith.constant 0 : i32
    %c0_i32_1 = arith.constant 0 : i32
    return %c0_i32, %c0_i32_0 : i32, i32
  }
  func.func @transform_8(%arg0: i32, %arg1: i32) -> (i32, i32) {
    %c0_i32 = arith.constant 0 : i32
    %c0_i32_0 = arith.constant 0 : i32
    %c0_i32_1 = arith.constant 0 : i32
    return %c0_i32, %c0_i32_0 : i32, i32
  }
  func.func @transform_9(%arg0: i32, %arg1: i32) -> (i32, i32, i32) {
    %c0_i32 = arith.constant 0 : i32
    %c0_i32_0 = arith.constant 0 : i32
    return %arg0, %arg1, %c0_i32 : i32, i32, i32
  }
}

</mosaic_0001>

<bundles_post_ra>
// kernel: panoptic_segformer_forward.1
= control target key start
LH: loop header
LB: loop body
LE: loop exit
PB: predicated region body
PF: predicated region fallthrough
CT: control target
= control target key end

     0   :  { %s3082_s30 = smov 0   ;;  %s3084_s10 = smov 0   ;;  %s3647_s0 = inlined_call_operand.vmem [shape: bf16[2,128,256], index: 0, kind: input, shape index: {}]   ;;  %s3648_s1 = inlined_call_operand.vmem [shape: bf16[2,64,256], index: 1, kind: input, shape index: {}]   ;;  %s3649_s2 = inlined_call_operand.vmem [shape: bf16[2,32,256], index: 2, kind: input, shape index: {}]   ;;  %s3650_s3 = inlined_call_operand.vmem [shape: bf16[128,256], index: 3, kind: input, shape index: {}]   ;;  %s3651_s4 = inlined_call_operand.vmem [shape: bf16[64,256], index: 4, kind: input, shape index: {}]   ;;  %s3652_s5 = inlined_call_operand.vmem [shape: bf16[32,256], index: 5, kind: input, shape index: {}]   ;;  %s3653_s6 = inlined_call_operand.vmem [shape: f32[1,256], index: 6, kind: input, shape index: {}]   ;;  %s3654_s7 = inlined_call_operand.vmem [shape: f32[1,256], index: 7, kind: input, shape index: {}]   ;;  %s3655_s8 = inlined_call_operand.vmem [shape: f32[1,256], index: 8, kind: input, shape index: {}]   ;;  %s3656_s9 = inlined_call_operand.vmem [shape: bf16[2,768,256], index: 9, kind: output, shape index: {}]  }
   0x1   :  { %3660 = sst [smem:[#allocation7_spill]] %s3649_s2  ;;  %s3086_s11 = smov 0  }
   0x2   :  { %s3088_s12 = smov 0   ;;  %s3090_s13 = smov 0  }
   0x3 LB: > { %3661 = sst [smem:[#allocation2_spill]] %s3019_s11  ;;  %s28_s14 = sadd.s32 1, %s3019_s11  ;;  %s3027_s13 = sphi %s3090_s13, %s19_s13   ;;  %s3023_s12 = sphi %s3088_s12, %s3671_s12   ;;  %s3019_s11 = sphi %s3086_s11, %s3670_s11   ;;  %s3015_s10 = sphi %s3084_s10, %s3669_s10   ;;  %s3011_s30 = sphi %s3082_s30, %s3668_s30  }
   0x4   : > { %3662 = sst [smem:[#allocation3_spill]] %s3023_s12  ;;  %s31_s15 = sadd.s32 1, %s3023_s12 }
   0x5   : > { %3663 = sst [smem:[#allocation4_spill]] %s3027_s13  ;;  %p29_p0 = scmp.ge.s32.totalorder %s28_s14, 3 }
   0x6   : > { %p2522_p1 = scmp.ge.s32.totalorder %s3027_s13, 1  ;;  %p390_p2 = scmp.lt.s32.totalorder %s3027_s13, 7 }
   0x7   : > { %s3673_s14 = smov (%p29_p0, %s28_s14), 0  ;;  %s3675_s15 = smov (!%p29_p0, %s31_s15), %s3023_s12 }
   0x8   : > { %3664 = sst [smem:[#allocation5_spill]] %s3673_s14  ;;  %p391_p3 = pnand %p2522_p1, %p390_p2 }
   0x9   : > { %p33_p4 = scmp.ge.s32.totalorder %s3675_s15, 2  ;;  %p465_p5 = scmp.lt.s32.totalorder (!%p391_p3), %s3011_s30, 0 }
   0xa   : > { %394 = sbr.rel (%p391_p3) target bundleno = 1171 (0x493), region = 56  ;;  %p468_p6 = scmp.lt.s32.totalorder (!%p391_p3), %s3015_s10, 1 }
   0xb   : > { %s3677_s15 = smov (%p33_p4, %s3675_s15), 0  ;;  %s2544_s18 = sshll.u32 (!%p391_p3), %s3011_s30, 5 }
   0xc   : > { %3665 = sst [smem:[#allocation6_spill]] %s3677_s15  ;;  %s3666_s2 = sld [smem:[#allocation7_spill]] (!%p391_p3) }
   0xd   : > { %p522_p8 = scmp.lt.s32.totalorder (!%p391_p3), %s2544_s18, 95  ;;  %p2547_p9 = scmp.ge.s32.totalorder (!%p391_p3), %s3011_s30, 1 }
  0x11   : > { %s466_s16 = scalar_select %p465_p5, %s3011_s30, 0 }
  0x12   : > { %s3679_s10 = smov (!%p468_p6, %s3015_s10), 1  ;;  %s3683_s18 = smov (!%p522_p8, %s2544_s18), 95 }
  0x13   : > { %s2523_s17 = sshll.u32 %s466_s16, 1  ;;  %s2524_s19 = sshll.u32 %s3679_s10, 5  ;;  %v3029_v2 = vmov (!%p2547_p9), 0   ;;  %v2929_v9 = vld [vmem:[%s3650_s3 + $0x4] ss:$8 sps:$4 sm:$0xff] (!%p2547_p9)   ;;  %v569_v49 = vlaneseq (!%p2547_p9) }
  0x14   : > { %p470_p7 = scmp.lt.s32.totalorder %s2523_s17, 1  ;;  %s2735_s20 = sshll.u32 %s3679_s10, 6  ;;  %803 = vmatprep.mubr.bf16.mxu0 (!%p2547_p9), %v3029_v2  ;;  %883 = vmatprep.mubr.bf16.mxu1 (!%p2547_p9), %v3029_v2  ;;  %v2931_v10 = vld [vmem:[%s3650_s3] ss:$8 sps:$4 sm:$0xff] (!%p2547_p9)   ;;  %v2932_v11 = vld [vmem:[%s3650_s3 + $0x14] ss:$8 sps:$4 sm:$0xff] (!%p2547_p9)  }
  0x15   : > { %s3120_s23 = scalar_lea.vmem %s3666_s2, %s2524_s19  ;;  %s3125_s26 = scalar_lea.vmem %s3648_s1, %s2735_s20  ;;  %771 = vmatprep.subr.bf16.mxu0 (!%p2547_p9), %v2929_v9  ;;  %2833 = vmatprep.subr.bf16.mxu1 (!%p2547_p9), %v2929_v9  ;;  %v2934_v13 = vld [vmem:[%s3650_s3 + $0x10] ss:$8 sps:$4 sm:$0xff] (!%p2547_p9)   ;;  %v2935_v15 = vld [vmem:[%s3650_s3 + $0x24] ss:$8 sps:$4 sm:$0xff] (!%p2547_p9)   ;;  %v2937_v17 = vld [vmem:[%s3650_s3 + $0x20] ss:$8 sps:$4 sm:$0xff] (!%p2547_p9)  }
  0x16   : > { %s3681_s17 = smov (!%p470_p7, %s2523_s17), 1  ;;  %s2861_s14 = smul.u32 192, %s3679_s10  ;;  %772 = vmatpush1.bf16.msra.mxu0 (!%p2547_p9), %v2931_v10  ;;  %2841 = vmatpush1.bf16.msra.mxu1 (!%p2547_p9), %v2931_v10  ;;  %v2938_v19 = vld [vmem:[%s3650_s3 + $0x34] ss:$8 sps:$4 sm:$0xff] (!%p2547_p9)   ;;  %v2940_v21 = vld [vmem:[%s3650_s3 + $0x30] ss:$8 sps:$4 sm:$0xff] (!%p2547_p9)  }
  0x17   : > { %s473_s27 = sadd.s32 %s2524_s19, %s3681_s17  ;;  %s2545_s12 = sshll.u32 %s3683_s18, 1  ;;  %773 = vmatprep.subr.bf16.mxu0 (!%p2547_p9), %v2932_v11  ;;  %2834 = vmatprep.subr.bf16.mxu1 (!%p2547_p9), %v2932_v11  ;;  %v2941_v23 = vld [vmem:[%s3650_s3 + $0x44] ss:$8 sps:$4 sm:$0xff] (!%p2547_p9)   ;;  %v2943_v25 = vld [vmem:[%s3650_s3 + $0x40] ss:$8 sps:$4 sm:$0xff] (!%p2547_p9)   ;;  %v570_v50 = vshrl.u32 (!%p2547_p9), %v569_v49, 7 }
  0x18   : > { %s2525_s28 = sshll.u32 %s473_s27, 2  ;;  %s526_s21 = sadd.s32 %s2861_s14, %s2545_s12  ;;  %v2944_v27 = vld [vmem:[%s3650_s3 + $0x54] ss:$8 sps:$4 sm:$0xff] (!%p2547_p9)   ;;  %v2946_v28 = vld [vmem:[%s3650_s3 + $0x50] ss:$8 sps:$4 sm:$0xff] (!%p2547_p9)  }
  0x19   : > { %s3130_s15 = scalar_lea.vmem %s3647_s0, %s2525_s28  ;;  %s2546_s22 = sshll.u32 %s526_s21, 2  ;;  %v2947_v29 = vld [vmem:[%s3650_s3 + $0x64] ss:$8 sps:$4 sm:$0xff] (!%p2547_p9)   ;;  %v2949_v30 = vld [vmem:[%s3650_s3 + $0x60] ss:$8 sps:$4 sm:$0xff] (!%p2547_p9)   ;;  %v571_v51 = vsub.s32 (!%p2547_p9), 0, %v570_v50 }
  0x1a   : > { %s3135_s13 = scalar_lea.vmem %s3656_s9, %s2546_s22  ;;  %534 = sbr.rel (%p2547_p9) target bundleno = 406 (0x196), region = 60  ;;  %v2905_v0 = vld [vmem:[%s3130_s15 + $0x4] ss:$8 sps:$4 sm:$0xff] (!%p2547_p9)   ;;  %v2907_v1 = vld [vmem:[%s3130_s15] ss:$8 sps:$4 sm:$0xff] (!%p2547_p9)   ;;  %774 = vmatpush1.bf16.msra.mxu0 (!%p2547_p9), %v2934_v13  ;;  %2842 = vmatpush1.bf16.msra.mxu1 (!%p2547_p9), %v2934_v13  ;;  %v575_v53 = vsub.s32 (!%p2547_p9), 1, %v570_v50 }
  0x1b   : > { %675 = vxpose.xlu1.c.b16.start [1/8] (!%p2547_p9), %v2905_v0, 128  ;;  %v2908_v3 = vld [vmem:[%s3130_s15 + $0x14] ss:$8 sps:$4 sm:$0xff] (!%p2547_p9)   ;;  %659 = vxpose.xlu0.c.b16.start [1/8] (!%p2547_p9), %v2907_v1, 128  ;;  %v2910_v4 = vld [vmem:[%s3130_s15 + $0x10] ss:$8 sps:$4 sm:$0xff] (!%p2547_p9)   ;;  %v2911_v5 = vld [vmem:[%s3130_s15 + $0x24] ss:$8 sps:$4 sm:$0xff] (!%p2547_p9)  }
  0x1c   : > { %v2913_v6 = vld [vmem:[%s3130_s15 + $0x20] ss:$8 sps:$4 sm:$0xff] (!%p2547_p9)   ;;  %v2914_v7 = vld [vmem:[%s3130_s15 + $0x34] ss:$8 sps:$4 sm:$0xff] (!%p2547_p9)   ;;  %v2916_v8 = vld [vmem:[%s3130_s15 + $0x30] ss:$8 sps:$4 sm:$0xff] (!%p2547_p9)   ;;  %775 = vmatprep.subr.bf16.mxu0 (!%p2547_p9), %v2935_v15  ;;  %2835 = vmatprep.subr.bf16.mxu1 (!%p2547_p9), %v2935_v15 }
  0x1d   : > { %v2917_v12 = vld [vmem:[%s3130_s15 + $0x44] ss:$8 sps:$4 sm:$0xff] (!%p2547_p9)   ;;  %v2919_v14 = vld [vmem:[%s3130_s15 + $0x40] ss:$8 sps:$4 sm:$0xff] (!%p2547_p9)   ;;  %v2920_v16 = vld [vmem:[%s3130_s15 + $0x54] ss:$8 sps:$4 sm:$0xff] (!%p2547_p9)  }
  0x1e   : > { %v2922_v18 = vld [vmem:[%s3130_s15 + $0x50] ss:$8 sps:$4 sm:$0xff] (!%p2547_p9)   ;;  %v2923_v20 = vld [vmem:[%s3130_s15 + $0x64] ss:$8 sps:$4 sm:$0xff] (!%p2547_p9)   ;;  %776 = vmatpush1.bf16.msra.mxu0 (!%p2547_p9), %v2937_v17  ;;  %v2925_v22 = vld [vmem:[%s3130_s15 + $0x60] ss:$8 sps:$4 sm:$0xff] (!%p2547_p9)   ;;  %2843 = vmatpush1.bf16.msra.mxu1 (!%p2547_p9), %v2937_v17 }
  0x1f   : > { %676 = vxpose.xlu1.c.b16.cont [2/8] (!%p2547_p9), %v2908_v3, 128  ;;  %660 = vxpose.xlu0.c.b16.cont [2/8] (!%p2547_p9), %v2910_v4, 128  ;;  %v2926_v24 = vld [vmem:[%s3130_s15 + $0x74] ss:$8 sps:$4 sm:$0xff] (!%p2547_p9)   ;;  %v2928_v26 = vld [vmem:[%s3130_s15 + $0x70] ss:$8 sps:$4 sm:$0xff] (!%p2547_p9)   ;;  %v567_v52 = vld [vmem:[%s3653_s6] sm:$0x3] (!%p2547_p9) }
  0x20   : > { %777 = vmatprep.subr.bf16.mxu0 (!%p2547_p9), %v2938_v19  ;;  %2836 = vmatprep.subr.bf16.mxu1 (!%p2547_p9), %v2938_v19  ;;  %v2950_v31 = vld [vmem:[%s3650_s3 + $0x74] ss:$8 sps:$4 sm:$0xff] (!%p2547_p9)   ;;  %v2952_v32 = vld [vmem:[%s3650_s3 + $0x70] ss:$8 sps:$4 sm:$0xff] (!%p2547_p9)   ;;  %v3223_v54 = vrot.slane (!%p2547_p9), %v567_v52, %v571_v51  ;;  %v3225_v55 = vrot.slane (!%p2547_p9), %v567_v52, %v575_v53 }
  0x22   : > { %778 = vmatpush1.bf16.msra.mxu0 %v2940_v21  ;;  %2844 = vmatpush1.bf16.msra.mxu1 %v2940_v21 }
  0x23   : > { %677 = vxpose.xlu1.c.b16.cont [3/8] %v2911_v5, 128  ;;  %661 = vxpose.xlu0.c.b16.cont [3/8] %v2913_v6, 128 }
  0x24   : > { %779 = vmatprep.subr.bf16.mxu0 %v2941_v23  ;;  %2837 = vmatprep.subr.bf16.mxu1 %v2941_v23 }
  0x26   : > { %780 = vmatpush1.bf16.msra.mxu0 %v2943_v25  ;;  %2845 = vmatpush1.bf16.msra.mxu1 %v2943_v25 }
  0x27   : > { %678 = vxpose.xlu1.c.b16.cont [4/8] %v2914_v7, 128  ;;  %662 = vxpose.xlu0.c.b16.cont [4/8] %v2916_v8, 128 }
  0x28   : > { %781 = vmatprep.subr.bf16.mxu0 %v2944_v27  ;;  %2838 = vmatprep.subr.bf16.mxu1 %v2944_v27 }
  0x2a   : > { %782 = vmatpush1.bf16.msra.mxu0 %v2946_v28  ;;  %2846 = vmatpush1.bf16.msra.mxu1 %v2946_v28 }
  0x2b   : > { %679 = vxpose.xlu1.c.b16.cont [5/8] %v2917_v12, 128  ;;  %663 = vxpose.xlu0.c.b16.cont [5/8] %v2919_v14, 128 }
  0x2c   : > { %783 = vmatprep.subr.bf16.mxu0 %v2947_v29  ;;  %2839 = vmatprep.subr.bf16.mxu1 %v2947_v29 }
  0x2e   : > { %784 = vmatpush1.bf16.msra.mxu0 %v2949_v30  ;;  %2847 = vmatpush1.bf16.msra.mxu1 %v2949_v30 }
  0x2f   : > { %680 = vxpose.xlu1.c.b16.cont [6/8] %v2920_v16, 128  ;;  %664 = vxpose.xlu0.c.b16.cont [6/8] %v2922_v18, 128 }
  0x30   : > { %785 = vmatprep.subr.bf16.mxu0 %v2950_v31  ;;  %2840 = vmatprep.subr.bf16.mxu1 %v2950_v31 }
  0x32   : > { %786 = vmatpush1.bf16.msra.mxu0 %v2952_v32  ;;  %2848 = vmatpush1.bf16.msra.mxu1 %v2952_v32 }
  0x33   : > { %681 = vxpose.xlu1.c.b16.cont [7/8] %v2923_v20, 128  ;;  %665 = vxpose.xlu0.c.b16.cont [7/8] %v2925_v22, 128 }
  0x37   : > { %682 = vxpose.xlu1.c.b16.end [8/8] %v2926_v24, 128  ;;  %666 = vxpose.xlu0.c.b16.end [8/8] %v2928_v26, 128 }
  0x81   : > { %v683_v33 = vpop.trf.xlu1  ;;  %v667_v34 = vpop.trf.xlu0 }
  0x82   : > { %884 = vmatmul.mubr.bf16.vlgmr.msra.gmra.mrb[0].mxu1 %v683_v33  ;;  %804 = vmatmul.mubr.bf16.vlgmr.msra.gmra.mrb[0].mxu0 %v667_v34 }
  0x83   : > { %893 = vmatprep.mubr.bf16.mxu1 %v3029_v2  ;;  %813 = vmatprep.mubr.bf16.mxu0 %v3029_v2 }
  0x85   : > { %v684_v35 = vpop.trf.xlu1  ;;  %v668_v36 = vpop.trf.xlu0 }
  0x89   : > { %v685_v37 = vpop.trf.xlu1  ;;  %v669_v38 = vpop.trf.xlu0 }
  0x8a   : > { %894 = vmatmul.mubr.bf16.gmra.mrb[4].mxu1 %v684_v35  ;;  %814 = vmatmul.mubr.bf16.gmra.mrb[4].mxu0 %v668_v36 }
  0x8b   : > { %903 = vmatprep.mubr.bf16.mxu1 %v3029_v2  ;;  %823 = vmatprep.mubr.bf16.mxu0 %v3029_v2 }
  0x8d   : > { %v686_v39 = vpop.trf.xlu1  ;;  %v670_v40 = vpop.trf.xlu0 }
  0x91   : > { %v687_v41 = vpop.trf.xlu1  ;;  %v671_v42 = vpop.trf.xlu0 }
  0x92   : > { %904 = vmatmul.mubr.bf16.gmra.mrb[8].mxu1 %v685_v37  ;;  %824 = vmatmul.mubr.bf16.gmra.mrb[8].mxu0 %v669_v38 }
  0x93   : > { %913 = vmatprep.mubr.bf16.mxu1 %v3029_v2  ;;  %833 = vmatprep.mubr.bf16.mxu0 %v3029_v2 }
  0x95   : > { %v688_v43 = vpop.trf.xlu1  ;;  %v672_v44 = vpop.trf.xlu0 }
  0x99   : > { %v689_v45 = vpop.trf.xlu1  ;;  %v673_v46 = vpop.trf.xlu0 }
  0x9a   : > { %914 = vmatmul.mubr.bf16.gmra.mrb[12].mxu1 %v686_v39  ;;  %834 = vmatmul.mubr.bf16.gmra.mrb[12].mxu0 %v670_v40 }
  0x9b   : > { %923 = vmatprep.mubr.bf16.mxu1 %v3029_v2  ;;  %843 = vmatprep.mubr.bf16.mxu0 %v3029_v2 }
  0x9d   : > { %v690_v47 = vpop.trf.xlu1  ;;  %v674_v48 = vpop.trf.xlu0 }
  0xa2   : > { %924 = vmatmul.mubr.bf16.gmra.mrb[16].mxu1 %v687_v41  ;;  %844 = vmatmul.mubr.bf16.gmra.mrb[16].mxu0 %v671_v42 }
  0xa3   : > { %933 = vmatprep.mubr.bf16.mxu1 %v3029_v2  ;;  %853 = vmatprep.mubr.bf16.mxu0 %v3029_v2 }
  0xaa   : > { %934 = vmatmul.mubr.bf16.gmra.mrb[20].mxu1 %v688_v43  ;;  %854 = vmatmul.mubr.bf16.gmra.mrb[20].mxu0 %v672_v44 }
  0xab   : > { %943 = vmatprep.mubr.bf16.mxu1 %v3029_v2  ;;  %863 = vmatprep.mubr.bf16.mxu0 %v3029_v2 }
  0xb2   : > { %944 = vmatmul.mubr.bf16.gmra.mrb[24].mxu1 %v689_v45  ;;  %864 = vmatmul.mubr.bf16.gmra.mrb[24].mxu0 %v673_v46 }
  0xb3   : > { %953 = vmatprep.mubr.bf16.mxu1 %v3029_v2  ;;  %873 = vmatprep.mubr.bf16.mxu0 %v3029_v2 }
  0xba   : > { %954 = vmatmul.mubr.bf16.gmra.mrb[28].mxu1 %v690_v47  ;;  %874 = vmatmul.mubr.bf16.gmra.mrb[28].mxu0 %v674_v48 }
 0x155   : > { %v885_v56 = vpop.f32.mrb[0].mxu1  ;;  %v805_v57 = vpop.f32.mrb[0].mxu0 }
 0x156   : > { %v886_v58 = vadd.f32 %v885_v56, %v3223_v54  ;;  %v887_v59 = vpop.f32.mrb[1].mxu1  ;;  %v806_v60 = vadd.f32 %v805_v57, %v3223_v54  ;;  %v807_v61 = vpop.f32.mrb[1].mxu0 }
 0x157   : > { %v888_v62 = vadd.f32 %v887_v59, %v3225_v55  ;;  %v889_v63 = vpop.f32.mrb[2].mxu1  ;;  %v808_v0 = vadd.f32 %v807_v61, %v3225_v55  ;;  %v809_v1 = vpop.f32.mrb[2].mxu0 }
 0x158   : > { %v890_v2 = vadd.f32 %v889_v63, %v3223_v54  ;;  %v891_v3 = vpop.f32.mrb[3].mxu1  ;;  %v810_v5 = vadd.f32 %v809_v1, %v3223_v54  ;;  %v811_v6 = vpop.f32.mrb[3].mxu0 }
 0x159   : > { %v2753_v4 = vpack.c.bf16 %v888_v62, %v886_v58  ;;  %v892_v7 = vadd.f32 %v891_v3, %v3225_v55  ;;  %v2737_v8 = vpack.c.bf16 %v808_v0, %v806_v60  ;;  %v812_v9 = vadd.f32 %v811_v6, %v3225_v55 }
 0x15b   : > { %1172 = vst [vmem:[%s3135_s13 + $0x80] sm:$0xff] %v2753_v4  ;;  %v2754_v10 = vpack.c.bf16 %v892_v7, %v890_v2  ;;  %1156 = vst [vmem:[%s3135_s13] sm:$0xff] %v2737_v8  ;;  %v2738_v11 = vpack.c.bf16 %v812_v9, %v810_v5 }
 0x15d   : > { %1173 = vst [vmem:[%s3135_s13 + $0x88] sm:$0xff] %v2754_v10  ;;  %v895_v12 = vpop.f32.mrb[4].mxu1  ;;  %1157 = vst [vmem:[%s3135_s13 + $0x8] sm:$0xff] %v2738_v11  ;;  %v815_v13 = vpop.f32.mrb[4].mxu0 }
 0x15e   : > { %v896_v14 = vadd.f32 %v895_v12, %v3223_v54  ;;  %v897_v15 = vpop.f32.mrb[5].mxu1  ;;  %v816_v16 = vadd.f32 %v815_v13, %v3223_v54  ;;  %v817_v17 = vpop.f32.mrb[5].mxu0 }
 0x15f   : > { %v898_v18 = vadd.f32 %v897_v15, %v3225_v55  ;;  %v899_v19 = vpop.f32.mrb[6].mxu1  ;;  %v818_v20 = vadd.f32 %v817_v17, %v3225_v55  ;;  %v819_v21 = vpop.f32.mrb[6].mxu0 }
 0x160   : > { %v900_v22 = vadd.f32 %v899_v19, %v3223_v54  ;;  %v901_v23 = vpop.f32.mrb[7].mxu1  ;;  %v820_v25 = vadd.f32 %v819_v21, %v3223_v54  ;;  %v821_v26 = vpop.f32.mrb[7].mxu0 }
 0x161   : > { %v2755_v24 = vpack.c.bf16 %v898_v18, %v896_v14  ;;  %v902_v27 = vadd.f32 %v901_v23, %v3225_v55  ;;  %v2739_v28 = vpack.c.bf16 %v818_v20, %v816_v16  ;;  %v822_v29 = vadd.f32 %v821_v26, %v3225_v55 }
 0x163   : > { %1174 = vst [vmem:[%s3135_s13 + $0x90] sm:$0xff] %v2755_v24  ;;  %v2756_v30 = vpack.c.bf16 %v902_v27, %v900_v22  ;;  %1158 = vst [vmem:[%s3135_s13 + $0x10] sm:$0xff] %v2739_v28  ;;  %v2740_v31 = vpack.c.bf16 %v822_v29, %v820_v25 }
 0x165   : > { %1175 = vst [vmem:[%s3135_s13 + $0x98] sm:$0xff] %v2756_v30  ;;  %v905_v32 = vpop.f32.mrb[8].mxu1  ;;  %1159 = vst [vmem:[%s3135_s13 + $0x18] sm:$0xff] %v2740_v31  ;;  %v825_v33 = vpop.f32.mrb[8].mxu0 }
 0x166   : > { %v906_v34 = vadd.f32 %v905_v32, %v3223_v54  ;;  %v907_v35 = vpop.f32.mrb[9].mxu1  ;;  %v826_v36 = vadd.f32 %v825_v33, %v3223_v54  ;;  %v827_v37 = vpop.f32.mrb[9].mxu0 }
 0x167   : > { %v908_v38 = vadd.f32 %v907_v35, %v3225_v55  ;;  %v909_v39 = vpop.f32.mrb[10].mxu1  ;;  %v828_v40 = vadd.f32 %v827_v37, %v3225_v55  ;;  %v829_v41 = vpop.f32.mrb[10].mxu0 }
 0x168   : > { %v910_v42 = vadd.f32 %v909_v39, %v3223_v54  ;;  %v911_v43 = vpop.f32.mrb[11].mxu1  ;;  %v830_v45 = vadd.f32 %v829_v41, %v3223_v54  ;;  %v831_v46 = vpop.f32.mrb[11].mxu0 }
 0x169   : > { %v2757_v44 = vpack.c.bf16 %v908_v38, %v906_v34  ;;  %v912_v47 = vadd.f32 %v911_v43, %v3225_v55  ;;  %v2741_v48 = vpack.c.bf16 %v828_v40, %v826_v36  ;;  %v832_v49 = vadd.f32 %v831_v46, %v3225_v55 }
 0x16b   : > { %1176 = vst [vmem:[%s3135_s13 + $0xa0] sm:$0xff] %v2757_v44  ;;  %v2758_v50 = vpack.c.bf16 %v912_v47, %v910_v42  ;;  %1160 = vst [vmem:[%s3135_s13 + $0x20] sm:$0xff] %v2741_v48  ;;  %v2742_v51 = vpack.c.bf16 %v832_v49, %v830_v45 }
 0x16d   : > { %1177 = vst [vmem:[%s3135_s13 + $0xa8] sm:$0xff] %v2758_v50  ;;  %v915_v52 = vpop.f32.mrb[12].mxu1  ;;  %1161 = vst [vmem:[%s3135_s13 + $0x28] sm:$0xff] %v2742_v51  ;;  %v835_v53 = vpop.f32.mrb[12].mxu0 }
 0x16e   : > { %v916_v56 = vadd.f32 %v915_v52, %v3223_v54  ;;  %v917_v57 = vpop.f32.mrb[13].mxu1  ;;  %v836_v58 = vadd.f32 %v835_v53, %v3223_v54  ;;  %v837_v59 = vpop.f32.mrb[13].mxu0 }
 0x16f   : > { %v918_v60 = vadd.f32 %v917_v57, %v3225_v55  ;;  %v919_v61 = vpop.f32.mrb[14].mxu1  ;;  %v838_v62 = vadd.f32 %v837_v59, %v3225_v55  ;;  %v839_v63 = vpop.f32.mrb[14].mxu0 }
 0x170   : > { %v920_v0 = vadd.f32 %v919_v61, %v3223_v54  ;;  %v921_v1 = vpop.f32.mrb[15].mxu1  ;;  %v840_v3 = vadd.f32 %v839_v63, %v3223_v54  ;;  %v841_v4 = vpop.f32.mrb[15].mxu0 }
 0x171   : > { %v2759_v2 = vpack.c.bf16 %v918_v60, %v916_v56  ;;  %v922_v5 = vadd.f32 %v921_v1, %v3225_v55  ;;  %v2743_v6 = vpack.c.bf16 %v838_v62, %v836_v58  ;;  %v842_v7 = vadd.f32 %v841_v4, %v3225_v55 }
 0x173   : > { %1178 = vst [vmem:[%s3135_s13 + $0xb0] sm:$0xff] %v2759_v2  ;;  %v2760_v8 = vpack.c.bf16 %v922_v5, %v920_v0  ;;  %1162 = vst [vmem:[%s3135_s13 + $0x30] sm:$0xff] %v2743_v6  ;;  %v2744_v9 = vpack.c.bf16 %v842_v7, %v840_v3 }
 0x175   : > { %1179 = vst [vmem:[%s3135_s13 + $0xb8] sm:$0xff] %v2760_v8  ;;  %v925_v10 = vpop.f32.mrb[16].mxu1  ;;  %1163 = vst [vmem:[%s3135_s13 + $0x38] sm:$0xff] %v2744_v9  ;;  %v845_v11 = vpop.f32.mrb[16].mxu0 }
 0x176   : > { %v926_v12 = vadd.f32 %v925_v10, %v3223_v54  ;;  %v927_v13 = vpop.f32.mrb[17].mxu1  ;;  %v846_v14 = vadd.f32 %v845_v11, %v3223_v54  ;;  %v847_v15 = vpop.f32.mrb[17].mxu0 }
 0x177   : > { %v928_v16 = vadd.f32 %v927_v13, %v3225_v55  ;;  %v929_v17 = vpop.f32.mrb[18].mxu1  ;;  %v848_v18 = vadd.f32 %v847_v15, %v3225_v55  ;;  %v849_v19 = vpop.f32.mrb[18].mxu0 }
 0x178   : > { %v930_v20 = vadd.f32 %v929_v17, %v3223_v54  ;;  %v931_v21 = vpop.f32.mrb[19].mxu1  ;;  %v850_v23 = vadd.f32 %v849_v19, %v3223_v54  ;;  %v851_v24 = vpop.f32.mrb[19].mxu0 }
 0x179   : > { %v2761_v22 = vpack.c.bf16 %v928_v16, %v926_v12  ;;  %v932_v25 = vadd.f32 %v931_v21, %v3225_v55  ;;  %v2745_v26 = vpack.c.bf16 %v848_v18, %v846_v14  ;;  %v852_v27 = vadd.f32 %v851_v24, %v3225_v55 }
 0x17b   : > { %1180 = vst [vmem:[%s3135_s13 + $0xc0] sm:$0xff] %v2761_v22  ;;  %v2762_v28 = vpack.c.bf16 %v932_v25, %v930_v20  ;;  %1164 = vst [vmem:[%s3135_s13 + $0x40] sm:$0xff] %v2745_v26  ;;  %v2746_v29 = vpack.c.bf16 %v852_v27, %v850_v23 }
 0x17d   : > { %1181 = vst [vmem:[%s3135_s13 + $0xc8] sm:$0xff] %v2762_v28  ;;  %v935_v30 = vpop.f32.mrb[20].mxu1  ;;  %1165 = vst [vmem:[%s3135_s13 + $0x48] sm:$0xff] %v2746_v29  ;;  %v855_v31 = vpop.f32.mrb[20].mxu0 }
 0x17e   : > { %v936_v32 = vadd.f32 %v935_v30, %v3223_v54  ;;  %v937_v33 = vpop.f32.mrb[21].mxu1  ;;  %v856_v34 = vadd.f32 %v855_v31, %v3223_v54  ;;  %v857_v35 = vpop.f32.mrb[21].mxu0 }
 0x17f   : > { %v938_v36 = vadd.f32 %v937_v33, %v3225_v55  ;;  %v939_v37 = vpop.f32.mrb[22].mxu1  ;;  %v858_v38 = vadd.f32 %v857_v35, %v3225_v55  ;;  %v859_v39 = vpop.f32.mrb[22].mxu0 }
 0x180   : > { %v940_v40 = vadd.f32 %v939_v37, %v3223_v54  ;;  %v941_v41 = vpop.f32.mrb[23].mxu1  ;;  %v860_v43 = vadd.f32 %v859_v39, %v3223_v54  ;;  %v861_v44 = vpop.f32.mrb[23].mxu0 }
 0x181   : > { %v2763_v42 = vpack.c.bf16 %v938_v36, %v936_v32  ;;  %v942_v45 = vadd.f32 %v941_v41, %v3225_v55  ;;  %v2747_v46 = vpack.c.bf16 %v858_v38, %v856_v34  ;;  %v862_v47 = vadd.f32 %v861_v44, %v3225_v55 }
 0x183   : > { %1182 = vst [vmem:[%s3135_s13 + $0xd0] sm:$0xff] %v2763_v42  ;;  %v2764_v48 = vpack.c.bf16 %v942_v45, %v940_v40  ;;  %1166 = vst [vmem:[%s3135_s13 + $0x50] sm:$0xff] %v2747_v46  ;;  %v2748_v49 = vpack.c.bf16 %v862_v47, %v860_v43 }
 0x185   : > { %1183 = vst [vmem:[%s3135_s13 + $0xd8] sm:$0xff] %v2764_v48  ;;  %v945_v50 = vpop.f32.mrb[24].mxu1  ;;  %1167 = vst [vmem:[%s3135_s13 + $0x58] sm:$0xff] %v2748_v49  ;;  %v865_v51 = vpop.f32.mrb[24].mxu0 }
 0x186   : > { %v946_v52 = vadd.f32 %v945_v50, %v3223_v54  ;;  %v947_v53 = vpop.f32.mrb[25].mxu1  ;;  %v866_v56 = vadd.f32 %v865_v51, %v3223_v54  ;;  %v867_v57 = vpop.f32.mrb[25].mxu0 }
 0x187   : > { %v948_v58 = vadd.f32 %v947_v53, %v3225_v55  ;;  %v949_v59 = vpop.f32.mrb[26].mxu1  ;;  %v868_v60 = vadd.f32 %v867_v57, %v3225_v55  ;;  %v869_v61 = vpop.f32.mrb[26].mxu0 }
 0x188   : > { %v950_v62 = vadd.f32 %v949_v59, %v3223_v54  ;;  %v951_v63 = vpop.f32.mrb[27].mxu1  ;;  %v870_v1 = vadd.f32 %v869_v61, %v3223_v54  ;;  %v871_v2 = vpop.f32.mrb[27].mxu0 }
 0x189   : > { %v2765_v0 = vpack.c.bf16 %v948_v58, %v946_v52  ;;  %v952_v3 = vadd.f32 %v951_v63, %v3225_v55  ;;  %v2749_v4 = vpack.c.bf16 %v868_v60, %v866_v56  ;;  %v872_v5 = vadd.f32 %v871_v2, %v3225_v55 }
 0x18b   : > { %1184 = vst [vmem:[%s3135_s13 + $0xe0] sm:$0xff] %v2765_v0  ;;  %v2766_v6 = vpack.c.bf16 %v952_v3, %v950_v62  ;;  %1168 = vst [vmem:[%s3135_s13 + $0x60] sm:$0xff] %v2749_v4  ;;  %v2750_v7 = vpack.c.bf16 %v872_v5, %v870_v1 }
 0x18d   : > { %1185 = vst [vmem:[%s3135_s13 + $0xe8] sm:$0xff] %v2766_v6  ;;  %v955_v8 = vpop.f32.mrb[28].mxu1  ;;  %1169 = vst [vmem:[%s3135_s13 + $0x68] sm:$0xff] %v2750_v7  ;;  %v875_v9 = vpop.f32.mrb[28].mxu0 }
 0x18e   : > { %v956_v10 = vadd.f32 %v955_v8, %v3223_v54  ;;  %v957_v11 = vpop.f32.mrb[29].mxu1  ;;  %v876_v12 = vadd.f32 %v875_v9, %v3223_v54  ;;  %v877_v13 = vpop.f32.mrb[29].mxu0 }
 0x18f   : > { %v958_v14 = vadd.f32 %v957_v11, %v3225_v55  ;;  %v959_v15 = vpop.f32.mrb[30].mxu1  ;;  %v878_v16 = vadd.f32 %v877_v13, %v3225_v55  ;;  %v879_v17 = vpop.f32.mrb[30].mxu0 }
 0x190   : > { %v960_v18 = vadd.f32 %v959_v15, %v3223_v54  ;;  %v961_v19 = vpop.f32.mrb[31].mxu1  ;;  %v880_v21 = vadd.f32 %v879_v17, %v3223_v54  ;;  %v881_v22 = vpop.f32.mrb[31].mxu0 }
 0x191   : > { %v2767_v20 = vpack.c.bf16 %v958_v14, %v956_v10  ;;  %v962_v23 = vadd.f32 %v961_v19, %v3225_v55  ;;  %v2751_v24 = vpack.c.bf16 %v878_v16, %v876_v12  ;;  %v882_v25 = vadd.f32 %v881_v22, %v3225_v55 }
 0x193   : > { %1186 = vst [vmem:[%s3135_s13 + $0xf0] sm:$0xff] %v2767_v20  ;;  %v2768_v26 = vpack.c.bf16 %v962_v23, %v960_v18  ;;  %1170 = vst [vmem:[%s3135_s13 + $0x70] sm:$0xff] %v2751_v24  ;;  %v2752_v27 = vpack.c.bf16 %v882_v25, %v880_v21 }
 0x195   : > { %1187 = vst [vmem:[%s3135_s13 + $0xf8] sm:$0xff] %v2768_v26  ;;  %1171 = vst [vmem:[%s3135_s13 + $0x78] sm:$0xff] %v2752_v27 }
 0x196 PF: > { %p1189_p10 = scmp.lt.s32.totalorder %s3011_s30, 2 }
 0x198   : > { %p1190_p11 = pnand %p2547_p9, %p1189_p10 }
 0x199   : > { %v2953_v54 = vld [vmem:[%s3125_s26 + $0x4] ss:$8 sps:$4 sm:$0xff] (!%p1190_p11)   ;;  %v2955_v55 = vld [vmem:[%s3125_s26] ss:$8 sps:$4 sm:$0xff] (!%p1190_p11)   ;;  %v3030_v28 = vmov (!%p1190_p11), 0   ;;  %vm1334_vm0 = vcmask (!%p1190_p11), 523264   ;;  %v1212_v61 = vlaneseq (!%p1190_p11) }
 0x19a   : > { %1193 = sbr.rel (%p1190_p11) target bundleno = 790 (0x316), region = 64  ;;  %1415 = vmatprep.mubr.bf16.mxu0 (!%p1190_p11), %v3030_v28  ;;  %1495 = vmatprep.mubr.bf16.mxu1 (!%p1190_p11), %v3030_v28  ;;  %v2956_v29 = vld [vmem:[%s3125_s26 + $0x14] ss:$8 sps:$4 sm:$0xff] (!%p1190_p11)   ;;  %v2958_v30 = vld [vmem:[%s3125_s26 + $0x10] ss:$8 sps:$4 sm:$0xff] (!%p1190_p11)  }
 0x19b   : > { %1278 = vxpose.xlu1.c.b16.start [1/4] (short) (!%p1190_p11), %v2953_v54, 128  ;;  %1262 = vxpose.xlu0.c.b16.start [1/4] (short) (!%p1190_p11), %v2955_v55, 128  ;;  %v2959_v31 = vld [vmem:[%s3125_s26 + $0x24] ss:$8 sps:$4 sm:$0xff] (!%p1190_p11)   ;;  %v2967_v33 = vld [vmem:[%s3651_s4] ss:$8 sps:$4 sm:$0xff] (!%p1190_p11)   ;;  %v2968_v35 = vld [vmem:[%s3651_s4 + $0x14] ss:$8 sps:$4 sm:$0xff] (!%p1190_p11)  }
 0x19c   : > { %v2965_v32 = vld [vmem:[%s3651_s4 + $0x4] ss:$8 sps:$4 sm:$0xff] (!%p1190_p11)   ;;  %v2961_v34 = vld [vmem:[%s3125_s26 + $0x20] ss:$8 sps:$4 sm:$0xff] (!%p1190_p11)   ;;  %v2970_v36 = vld [vmem:[%s3651_s4 + $0x10] ss:$8 sps:$4 sm:$0xff] (!%p1190_p11)  }
 0x19d   : > { %1383 = vmatprep.subr.bf16.mxu0 (!%p1190_p11), %v2965_v32  ;;  %2849 = vmatprep.subr.bf16.mxu1 (!%p1190_p11), %v2965_v32  ;;  %v2962_v37 = vld [vmem:[%s3125_s26 + $0x34] ss:$8 sps:$4 sm:$0xff] (!%p1190_p11)   ;;  %v2971_v38 = vld [vmem:[%s3651_s4 + $0x24] ss:$8 sps:$4 sm:$0xff] (!%p1190_p11)   ;;  %v2964_v39 = vld [vmem:[%s3125_s26 + $0x30] ss:$8 sps:$4 sm:$0xff] (!%p1190_p11)  }
 0x19e   : > { %1384 = vmatpush1.bf16.msra.mxu0 (!%p1190_p11), %v2967_v33  ;;  %2853 = vmatpush1.bf16.msra.mxu1 (!%p1190_p11), %v2967_v33  ;;  %v2973_v40 = vld [vmem:[%s3651_s4 + $0x20] ss:$8 sps:$4 sm:$0xff] (!%p1190_p11)   ;;  %v2974_v41 = vld [vmem:[%s3651_s4 + $0x34] ss:$8 sps:$4 sm:$0xff] (!%p1190_p11)   ;;  %v2976_v42 = vld [vmem:[%s3651_s4 + $0x30] ss:$8 sps:$4 sm:$0xff] (!%p1190_p11)  }
 0x19f   : > { %1279 = vxpose.xlu1.c.b16.cont [2/4] (short) (!%p1190_p11), %v2956_v29, 128  ;;  %1263 = vxpose.xlu0.c.b16.cont [2/4] (short) (!%p1190_p11), %v2958_v30, 128  ;;  %v1213_v62 = vshrl.u32 (!%p1190_p11), %v1212_v61, 7  ;;  %v1210_v0 = vld [vmem:[%s3654_s7] sm:$0x3] (!%p1190_p11) }
 0x1a0   : > { %1385 = vmatprep.subr.bf16.mxu0 (!%p1190_p11), %v2968_v35  ;;  %2850 = vmatprep.subr.bf16.mxu1 (!%p1190_p11), %v2968_v35 }
 0x1a1   : > { %v1214_v63 = vsub.s32 0, %v1213_v62  ;;  %v1218_v1 = vsub.s32 1, %v1213_v62 }
 0x1a2   : > { %1386 = vmatpush1.bf16.msra.mxu0 %v2970_v36  ;;  %2854 = vmatpush1.bf16.msra.mxu1 %v2970_v36 }
 0x1a3   : > { %1280 = vxpose.xlu1.c.b16.cont [3/4] (short) %v2959_v31, 128  ;;  %1264 = vxpose.xlu0.c.b16.cont [3/4] (short) %v2961_v34, 128  ;;  %v3395_v2 = vrot.slane %v1210_v0, %v1214_v63  ;;  %v3397_v3 = vrot.slane %v1210_v0, %v1218_v1 }
 0x1a4   : > { %1387 = vmatprep.subr.bf16.mxu0 %v2971_v38  ;;  %2851 = vmatprep.subr.bf16.mxu1 %v2971_v38 }
 0x1a6   : > { %1388 = vmatpush1.bf16.msra.mxu0 %v2973_v40  ;;  %2855 = vmatpush1.bf16.msra.mxu1 %v2973_v40 }
 0x1a7   : > { %1281 = vxpose.xlu1.c.b16.end [4/4] (short) %v2962_v37, 128  ;;  %1265 = vxpose.xlu0.c.b16.end [4/4] (short) %v2964_v39, 128 }
 0x1a8   : > { %1389 = vmatprep.subr.bf16.mxu0 %v2974_v41  ;;  %2852 = vmatprep.subr.bf16.mxu1 %v2974_v41 }
 0x1aa   : > { %1390 = vmatpush1.bf16.msra.mxu0 %v2976_v42  ;;  %2856 = vmatpush1.bf16.msra.mxu1 %v2976_v42 }
 0x201   : > { %v1286_v43 = vpop.trf.xlu1  ;;  %v1270_v44 = vpop.trf.xlu0 }
 0x202   : > { %2636 = vmatmul.mubr.msk.bf16.vlgmr.msra.gmra.mrb[0].mxu1 %vm1334_vm0, %v1286_v43  ;;  %2628 = vmatmul.mubr.msk.bf16.vlgmr.msra.gmra.mrb[0].mxu0 %vm1334_vm0, %v1270_v44 }
 0x203   : > { %1505 = vmatprep.mubr.bf16.mxu1 %v3030_v28  ;;  %1425 = vmatprep.mubr.bf16.mxu0 %v3030_v28 }
 0x205   : > { %v1287_v45 = vpop.trf.xlu1  ;;  %v1271_v46 = vpop.trf.xlu0 }
 0x209   : > { %v1288_v47 = vpop.trf.xlu1  ;;  %v1272_v48 = vpop.trf.xlu0 }
 0x20a   : > { %2637 = vmatmul.mubr.msk.bf16.gmra.mrb[4].mxu1 %vm1334_vm0, %v1287_v45  ;;  %2629 = vmatmul.mubr.msk.bf16.gmra.mrb[4].mxu0 %vm1334_vm0, %v1271_v46 }
 0x20b   : > { %1515 = vmatprep.mubr.bf16.mxu1 %v3030_v28  ;;  %1435 = vmatprep.mubr.bf16.mxu0 %v3030_v28 }
 0x20d   : > { %v1289_v49 = vpop.trf.xlu1  ;;  %v1273_v50 = vpop.trf.xlu0 }
 0x211   : > { %v1290_v51 = vpop.trf.xlu1  ;;  %v1274_v52 = vpop.trf.xlu0 }
 0x212   : > { %2638 = vmatmul.mubr.msk.bf16.gmra.mrb[8].mxu1 %vm1334_vm0, %v1288_v47  ;;  %2630 = vmatmul.mubr.msk.bf16.gmra.mrb[8].mxu0 %vm1334_vm0, %v1272_v48 }
 0x213   : > { %1525 = vmatprep.mubr.bf16.mxu1 %v3030_v28  ;;  %1445 = vmatprep.mubr.bf16.mxu0 %v3030_v28 }
 0x215   : > { %v1291_v53 = vpop.trf.xlu1  ;;  %v1275_v56 = vpop.trf.xlu0 }
 0x219   : > { %v1292_v57 = vpop.trf.xlu1  ;;  %v1276_v58 = vpop.trf.xlu0 }
 0x21a   : > { %2639 = vmatmul.mubr.msk.bf16.gmra.mrb[12].mxu1 %vm1334_vm0, %v1289_v49  ;;  %2631 = vmatmul.mubr.msk.bf16.gmra.mrb[12].mxu0 %vm1334_vm0, %v1273_v50 }
 0x21b   : > { %1535 = vmatprep.mubr.bf16.mxu1 %v3030_v28  ;;  %1455 = vmatprep.mubr.bf16.mxu0 %v3030_v28 }
 0x21d   : > { %v1293_v59 = vpop.trf.xlu1  ;;  %v1277_v60 = vpop.trf.xlu0 }
 0x222   : > { %2640 = vmatmul.mubr.msk.bf16.gmra.mrb[16].mxu1 %vm1334_vm0, %v1290_v51  ;;  %2632 = vmatmul.mubr.msk.bf16.gmra.mrb[16].mxu0 %vm1334_vm0, %v1274_v52 }
 0x223   : > { %1545 = vmatprep.mubr.bf16.mxu1 %v3030_v28  ;;  %1465 = vmatprep.mubr.bf16.mxu0 %v3030_v28 }
 0x22a   : > { %2641 = vmatmul.mubr.msk.bf16.gmra.mrb[20].mxu1 %vm1334_vm0, %v1291_v53  ;;  %2633 = vmatmul.mubr.msk.bf16.gmra.mrb[20].mxu0 %vm1334_vm0, %v1275_v56 }
 0x22b   : > { %1555 = vmatprep.mubr.bf16.mxu1 %v3030_v28  ;;  %1475 = vmatprep.mubr.bf16.mxu0 %v3030_v28 }
 0x232   : > { %2642 = vmatmul.mubr.msk.bf16.gmra.mrb[24].mxu1 %vm1334_vm0, %v1292_v57  ;;  %2634 = vmatmul.mubr.msk.bf16.gmra.mrb[24].mxu0 %vm1334_vm0, %v1276_v58 }
 0x233   : > { %1565 = vmatprep.mubr.bf16.mxu1 %v3030_v28  ;;  %1485 = vmatprep.mubr.bf16.mxu0 %v3030_v28 }
 0x23a   : > { %2643 = vmatmul.mubr.msk.bf16.gmra.mrb[28].mxu1 %vm1334_vm0, %v1293_v59  ;;  %2635 = vmatmul.mubr.msk.bf16.gmra.mrb[28].mxu0 %vm1334_vm0, %v1277_v60 }
 0x2d5   : > { %v1497_v4 = vpop.f32.mrb[0].mxu1  ;;  %v1417_v5 = vpop.f32.mrb[0].mxu0 }
 0x2d6   : > { %v1498_v6 = vadd.f32 %v1497_v4, %v3395_v2  ;;  %v1499_v7 = vpop.f32.mrb[1].mxu1  ;;  %v1418_v8 = vadd.f32 %v1417_v5, %v3395_v2  ;;  %v1419_v9 = vpop.f32.mrb[1].mxu0 }
 0x2d7   : > { %v1500_v10 = vadd.f32 %v1499_v7, %v3397_v3  ;;  %v1501_v11 = vpop.f32.mrb[2].mxu1  ;;  %v1420_v12 = vadd.f32 %v1419_v9, %v3397_v3  ;;  %v1421_v13 = vpop.f32.mrb[2].mxu0 }
 0x2d8   : > { %v1502_v14 = vadd.f32 %v1501_v11, %v3395_v2  ;;  %v1503_v15 = vpop.f32.mrb[3].mxu1  ;;  %v1422_v17 = vadd.f32 %v1421_v13, %v3395_v2  ;;  %v1423_v18 = vpop.f32.mrb[3].mxu0 }
 0x2d9   : > { %v2785_v16 = vpack.c.bf16 %v1500_v10, %v1498_v6  ;;  %v1504_v19 = vadd.f32 %v1503_v15, %v3397_v3  ;;  %v2769_v20 = vpack.c.bf16 %v1420_v12, %v1418_v8  ;;  %v1424_v21 = vadd.f32 %v1423_v18, %v3397_v3 }
 0x2db   : > { %1784 = vst [vmem:[%s3135_s13 + $0x80] sm:$0xff] %v2785_v16  ;;  %v2786_v22 = vpack.c.bf16 %v1504_v19, %v1502_v14  ;;  %1768 = vst [vmem:[%s3135_s13] sm:$0xff] %v2769_v20  ;;  %v2770_v23 = vpack.c.bf16 %v1424_v21, %v1422_v17 }
 0x2dd   : > { %1785 = vst [vmem:[%s3135_s13 + $0x88] sm:$0xff] %v2786_v22  ;;  %v1507_v24 = vpop.f32.mrb[4].mxu1  ;;  %1769 = vst [vmem:[%s3135_s13 + $0x8] sm:$0xff] %v2770_v23  ;;  %v1427_v25 = vpop.f32.mrb[4].mxu0 }
 0x2de   : > { %v1508_v26 = vadd.f32 %v1507_v24, %v3395_v2  ;;  %v1509_v27 = vpop.f32.mrb[5].mxu1  ;;  %v1428_v54 = vadd.f32 %v1427_v25, %v3395_v2  ;;  %v1429_v55 = vpop.f32.mrb[5].mxu0 }
 0x2df   : > { %v1510_v28 = vadd.f32 %v1509_v27, %v3397_v3  ;;  %v1511_v29 = vpop.f32.mrb[6].mxu1  ;;  %v1430_v30 = vadd.f32 %v1429_v55, %v3397_v3  ;;  %v1431_v31 = vpop.f32.mrb[6].mxu0 }
 0x2e0   : > { %v1512_v32 = vadd.f32 %v1511_v29, %v3395_v2  ;;  %v1513_v33 = vpop.f32.mrb[7].mxu1  ;;  %v1432_v35 = vadd.f32 %v1431_v31, %v3395_v2  ;;  %v1433_v36 = vpop.f32.mrb[7].mxu0 }
 0x2e1   : > { %v2787_v34 = vpack.c.bf16 %v1510_v28, %v1508_v26  ;;  %v1514_v37 = vadd.f32 %v1513_v33, %v3397_v3  ;;  %v2771_v38 = vpack.c.bf16 %v1430_v30, %v1428_v54  ;;  %v1434_v39 = vadd.f32 %v1433_v36, %v3397_v3 }
 0x2e3   : > { %1786 = vst [vmem:[%s3135_s13 + $0x90] sm:$0xff] %v2787_v34  ;;  %v2788_v40 = vpack.c.bf16 %v1514_v37, %v1512_v32  ;;  %1770 = vst [vmem:[%s3135_s13 + $0x10] sm:$0xff] %v2771_v38  ;;  %v2772_v41 = vpack.c.bf16 %v1434_v39, %v1432_v35 }
 0x2e5   : > { %1787 = vst [vmem:[%s3135_s13 + $0x98] sm:$0xff] %v2788_v40  ;;  %v1517_v42 = vpop.f32.mrb[8].mxu1  ;;  %1771 = vst [vmem:[%s3135_s13 + $0x18] sm:$0xff] %v2772_v41  ;;  %v1437_v43 = vpop.f32.mrb[8].mxu0 }
 0x2e6   : > { %v1518_v44 = vadd.f32 %v1517_v42, %v3395_v2  ;;  %v1519_v45 = vpop.f32.mrb[9].mxu1  ;;  %v1438_v46 = vadd.f32 %v1437_v43, %v3395_v2  ;;  %v1439_v47 = vpop.f32.mrb[9].mxu0 }
 0x2e7   : > { %v1520_v48 = vadd.f32 %v1519_v45, %v3397_v3  ;;  %v1521_v49 = vpop.f32.mrb[10].mxu1  ;;  %v1440_v50 = vadd.f32 %v1439_v47, %v3397_v3  ;;  %v1441_v51 = vpop.f32.mrb[10].mxu0 }
 0x2e8   : > { %v1522_v52 = vadd.f32 %v1521_v49, %v3395_v2  ;;  %v1523_v53 = vpop.f32.mrb[11].mxu1  ;;  %v1442_v57 = vadd.f32 %v1441_v51, %v3395_v2  ;;  %v1443_v58 = vpop.f32.mrb[11].mxu0 }
 0x2e9   : > { %v2789_v56 = vpack.c.bf16 %v1520_v48, %v1518_v44  ;;  %v1524_v59 = vadd.f32 %v1523_v53, %v3397_v3  ;;  %v2773_v60 = vpack.c.bf16 %v1440_v50, %v1438_v46  ;;  %v1444_v61 = vadd.f32 %v1443_v58, %v3397_v3 }
 0x2eb   : > { %1788 = vst [vmem:[%s3135_s13 + $0xa0] sm:$0xff] %v2789_v56  ;;  %v2790_v62 = vpack.c.bf16 %v1524_v59, %v1522_v52  ;;  %1772 = vst [vmem:[%s3135_s13 + $0x20] sm:$0xff] %v2773_v60  ;;  %v2774_v63 = vpack.c.bf16 %v1444_v61, %v1442_v57 }
 0x2ed   : > { %1789 = vst [vmem:[%s3135_s13 + $0xa8] sm:$0xff] %v2790_v62  ;;  %v1527_v0 = vpop.f32.mrb[12].mxu1  ;;  %1773 = vst [vmem:[%s3135_s13 + $0x28] sm:$0xff] %v2774_v63  ;;  %v1447_v1 = vpop.f32.mrb[12].mxu0 }
 0x2ee   : > { %v1528_v4 = vadd.f32 %v1527_v0, %v3395_v2  ;;  %v1529_v5 = vpop.f32.mrb[13].mxu1  ;;  %v1448_v6 = vadd.f32 %v1447_v1, %v3395_v2  ;;  %v1449_v7 = vpop.f32.mrb[13].mxu0 }
 0x2ef   : > { %v1530_v8 = vadd.f32 %v1529_v5, %v3397_v3  ;;  %v1531_v9 = vpop.f32.mrb[14].mxu1  ;;  %v1450_v10 = vadd.f32 %v1449_v7, %v3397_v3  ;;  %v1451_v11 = vpop.f32.mrb[14].mxu0 }
 0x2f0   : > { %v1532_v12 = vadd.f32 %v1531_v9, %v3395_v2  ;;  %v1533_v13 = vpop.f32.mrb[15].mxu1  ;;  %v1452_v15 = vadd.f32 %v1451_v11, %v3395_v2  ;;  %v1453_v16 = vpop.f32.mrb[15].mxu0 }
 0x2f1   : > { %v2791_v14 = vpack.c.bf16 %v1530_v8, %v1528_v4  ;;  %v1534_v17 = vadd.f32 %v1533_v13, %v3397_v3  ;;  %v2775_v18 = vpack.c.bf16 %v1450_v10, %v1448_v6  ;;  %v1454_v19 = vadd.f32 %v1453_v16, %v3397_v3 }
 0x2f3   : > { %1790 = vst [vmem:[%s3135_s13 + $0xb0] sm:$0xff] %v2791_v14  ;;  %v2792_v20 = vpack.c.bf16 %v1534_v17, %v1532_v12  ;;  %1774 = vst [vmem:[%s3135_s13 + $0x30] sm:$0xff] %v2775_v18  ;;  %v2776_v21 = vpack.c.bf16 %v1454_v19, %v1452_v15 }
 0x2f5   : > { %1791 = vst [vmem:[%s3135_s13 + $0xb8] sm:$0xff] %v2792_v20  ;;  %v1537_v22 = vpop.f32.mrb[16].mxu1  ;;  %1775 = vst [vmem:[%s3135_s13 + $0x38] sm:$0xff] %v2776_v21  ;;  %v1457_v23 = vpop.f32.mrb[16].mxu0 }
 0x2f6   : > { %v1538_v24 = vadd.f32 %v1537_v22, %v3395_v2  ;;  %v1539_v25 = vpop.f32.mrb[17].mxu1  ;;  %v1458_v26 = vadd.f32 %v1457_v23, %v3395_v2  ;;  %v1459_v27 = vpop.f32.mrb[17].mxu0 }
 0x2f7   : > { %v1540_v54 = vadd.f32 %v1539_v25, %v3397_v3  ;;  %v1541_v55 = vpop.f32.mrb[18].mxu1  ;;  %v1460_v28 = vadd.f32 %v1459_v27, %v3397_v3  ;;  %v1461_v29 = vpop.f32.mrb[18].mxu0 }
 0x2f8   : > { %v1542_v30 = vadd.f32 %v1541_v55, %v3395_v2  ;;  %v1543_v31 = vpop.f32.mrb[19].mxu1  ;;  %v1462_v33 = vadd.f32 %v1461_v29, %v3395_v2  ;;  %v1463_v34 = vpop.f32.mrb[19].mxu0 }
 0x2f9   : > { %v2793_v32 = vpack.c.bf16 %v1540_v54, %v1538_v24  ;;  %v1544_v35 = vadd.f32 %v1543_v31, %v3397_v3  ;;  %v2777_v36 = vpack.c.bf16 %v1460_v28, %v1458_v26  ;;  %v1464_v37 = vadd.f32 %v1463_v34, %v3397_v3 }
 0x2fb   : > { %1792 = vst [vmem:[%s3135_s13 + $0xc0] sm:$0xff] %v2793_v32  ;;  %v2794_v38 = vpack.c.bf16 %v1544_v35, %v1542_v30  ;;  %1776 = vst [vmem:[%s3135_s13 + $0x40] sm:$0xff] %v2777_v36  ;;  %v2778_v39 = vpack.c.bf16 %v1464_v37, %v1462_v33 }
 0x2fd   : > { %1793 = vst [vmem:[%s3135_s13 + $0xc8] sm:$0xff] %v2794_v38  ;;  %v1547_v40 = vpop.f32.mrb[20].mxu1  ;;  %1777 = vst [vmem:[%s3135_s13 + $0x48] sm:$0xff] %v2778_v39  ;;  %v1467_v41 = vpop.f32.mrb[20].mxu0 }
 0x2fe   : > { %v1548_v42 = vadd.f32 %v1547_v40, %v3395_v2  ;;  %v1549_v43 = vpop.f32.mrb[21].mxu1  ;;  %v1468_v44 = vadd.f32 %v1467_v41, %v3395_v2  ;;  %v1469_v45 = vpop.f32.mrb[21].mxu0 }
 0x2ff   : > { %v1550_v46 = vadd.f32 %v1549_v43, %v3397_v3  ;;  %v1551_v47 = vpop.f32.mrb[22].mxu1  ;;  %v1470_v48 = vadd.f32 %v1469_v45, %v3397_v3  ;;  %v1471_v49 = vpop.f32.mrb[22].mxu0 }
 0x300   : > { %v1552_v50 = vadd.f32 %v1551_v47, %v3395_v2  ;;  %v1553_v51 = vpop.f32.mrb[23].mxu1  ;;  %v1472_v53 = vadd.f32 %v1471_v49, %v3395_v2  ;;  %v1473_v56 = vpop.f32.mrb[23].mxu0 }
 0x301   : > { %v2795_v52 = vpack.c.bf16 %v1550_v46, %v1548_v42  ;;  %v1554_v57 = vadd.f32 %v1553_v51, %v3397_v3  ;;  %v2779_v58 = vpack.c.bf16 %v1470_v48, %v1468_v44  ;;  %v1474_v59 = vadd.f32 %v1473_v56, %v3397_v3 }
 0x303   : > { %1794 = vst [vmem:[%s3135_s13 + $0xd0] sm:$0xff] %v2795_v52  ;;  %v2796_v60 = vpack.c.bf16 %v1554_v57, %v1552_v50  ;;  %1778 = vst [vmem:[%s3135_s13 + $0x50] sm:$0xff] %v2779_v58  ;;  %v2780_v61 = vpack.c.bf16 %v1474_v59, %v1472_v53 }
 0x305   : > { %1795 = vst [vmem:[%s3135_s13 + $0xd8] sm:$0xff] %v2796_v60  ;;  %v1557_v62 = vpop.f32.mrb[24].mxu1  ;;  %1779 = vst [vmem:[%s3135_s13 + $0x58] sm:$0xff] %v2780_v61  ;;  %v1477_v63 = vpop.f32.mrb[24].mxu0 }
 0x306   : > { %v1558_v0 = vadd.f32 %v1557_v62, %v3395_v2  ;;  %v1559_v1 = vpop.f32.mrb[25].mxu1  ;;  %v1478_v4 = vadd.f32 %v1477_v63, %v3395_v2  ;;  %v1479_v5 = vpop.f32.mrb[25].mxu0 }
 0x307   : > { %v1560_v6 = vadd.f32 %v1559_v1, %v3397_v3  ;;  %v1561_v7 = vpop.f32.mrb[26].mxu1  ;;  %v1480_v8 = vadd.f32 %v1479_v5, %v3397_v3  ;;  %v1481_v9 = vpop.f32.mrb[26].mxu0 }
 0x308   : > { %v1562_v10 = vadd.f32 %v1561_v7, %v3395_v2  ;;  %v1563_v11 = vpop.f32.mrb[27].mxu1  ;;  %v1482_v13 = vadd.f32 %v1481_v9, %v3395_v2  ;;  %v1483_v14 = vpop.f32.mrb[27].mxu0 }
 0x309   : > { %v2797_v12 = vpack.c.bf16 %v1560_v6, %v1558_v0  ;;  %v1564_v15 = vadd.f32 %v1563_v11, %v3397_v3  ;;  %v2781_v16 = vpack.c.bf16 %v1480_v8, %v1478_v4  ;;  %v1484_v17 = vadd.f32 %v1483_v14, %v3397_v3 }
 0x30b   : > { %1796 = vst [vmem:[%s3135_s13 + $0xe0] sm:$0xff] %v2797_v12  ;;  %v2798_v18 = vpack.c.bf16 %v1564_v15, %v1562_v10  ;;  %1780 = vst [vmem:[%s3135_s13 + $0x60] sm:$0xff] %v2781_v16  ;;  %v2782_v19 = vpack.c.bf16 %v1484_v17, %v1482_v13 }
 0x30d   : > { %1797 = vst [vmem:[%s3135_s13 + $0xe8] sm:$0xff] %v2798_v18  ;;  %v1567_v20 = vpop.f32.mrb[28].mxu1  ;;  %1781 = vst [vmem:[%s3135_s13 + $0x68] sm:$0xff] %v2782_v19  ;;  %v1487_v21 = vpop.f32.mrb[28].mxu0 }
 0x30e   : > { %v1568_v22 = vadd.f32 %v1567_v20, %v3395_v2  ;;  %v1569_v23 = vpop.f32.mrb[29].mxu1  ;;  %v1488_v24 = vadd.f32 %v1487_v21, %v3395_v2  ;;  %v1489_v25 = vpop.f32.mrb[29].mxu0 }
 0x30f   : > { %v1570_v26 = vadd.f32 %v1569_v23, %v3397_v3  ;;  %v1571_v27 = vpop.f32.mrb[30].mxu1  ;;  %v1490_v54 = vadd.f32 %v1489_v25, %v3397_v3  ;;  %v1491_v55 = vpop.f32.mrb[30].mxu0 }
 0x310   : > { %v1572_v28 = vadd.f32 %v1571_v27, %v3395_v2  ;;  %v1573_v29 = vpop.f32.mrb[31].mxu1  ;;  %v1492_v31 = vadd.f32 %v1491_v55, %v3395_v2  ;;  %v1493_v32 = vpop.f32.mrb[31].mxu0 }
 0x311   : > { %v2799_v30 = vpack.c.bf16 %v1570_v26, %v1568_v22  ;;  %v1574_v33 = vadd.f32 %v1573_v29, %v3397_v3  ;;  %v2783_v34 = vpack.c.bf16 %v1490_v54, %v1488_v24  ;;  %v1494_v35 = vadd.f32 %v1493_v32, %v3397_v3 }
 0x313   : > { %1798 = vst [vmem:[%s3135_s13 + $0xf0] sm:$0xff] %v2799_v30  ;;  %v2800_v36 = vpack.c.bf16 %v1574_v33, %v1572_v28  ;;  %1782 = vst [vmem:[%s3135_s13 + $0x70] sm:$0xff] %v2783_v34  ;;  %v2784_v37 = vpack.c.bf16 %v1494_v35, %v1492_v31 }
 0x315   : > { %1799 = vst [vmem:[%s3135_s13 + $0xf8] sm:$0xff] %v2800_v36  ;;  %1783 = vst [vmem:[%s3135_s13 + $0x78] sm:$0xff] %v2784_v37 }
 0x316 PF: > { %1803 = sbr.rel (%p1189_p10) target bundleno = 1171 (0x493), region = 68  ;;  %v2977_v2 = vld [vmem:[%s3120_s23 + $0x4] ss:$8 sps:$4 sm:$0xff] (!%p1189_p10)   ;;  %v2979_v38 = vld [vmem:[%s3120_s23] ss:$8 sps:$4 sm:$0xff] (!%p1189_p10)   ;;  %v3031_v39 = vmov (!%p1189_p10), 0   ;;  %v1814_v63 = vlaneseq (!%p1189_p10) }
 0x317   : > { %1977 = vmatprep.mubr.bf16.mxu0 (!%p1189_p10), %v3031_v39  ;;  %2057 = vmatprep.mubr.bf16.mxu1 (!%p1189_p10), %v3031_v39  ;;  %v2980_v3 = vld [vmem:[%s3120_s23 + $0x14] ss:$8 sps:$4 sm:$0xff] (!%p1189_p10)   ;;  %v2982_v40 = vld [vmem:[%s3120_s23 + $0x10] ss:$8 sps:$4 sm:$0xff] (!%p1189_p10)   ;;  %v2983_v41 = vld [vmem:[%s3652_s5 + $0x4] ss:$8 sps:$4 sm:$0xff] (!%p1189_p10)  }
 0x318   : > { %1860 = vxpose.xlu1.c.b16.start [1/2] (short) (!%p1189_p10), %v2977_v2, 128  ;;  %1844 = vxpose.xlu0.c.b16.start [1/2] (short) (!%p1189_p10), %v2979_v38, 128  ;;  %v2985_v42 = vld [vmem:[%s3652_s5] ss:$8 sps:$4 sm:$0xff] (!%p1189_p10)   ;;  %v2986_v43 = vld [vmem:[%s3652_s5 + $0x14] ss:$8 sps:$4 sm:$0xff] (!%p1189_p10)   ;;  %v2988_v44 = vld [vmem:[%s3652_s5 + $0x10] ss:$8 sps:$4 sm:$0xff] (!%p1189_p10)  }
 0x319   : > { %1945 = vmatprep.subr.bf16.mxu0 (!%p1189_p10), %v2983_v41  ;;  %2857 = vmatprep.subr.bf16.mxu1 (!%p1189_p10), %v2983_v41  ;;  %vm1896_vm1 = vcmask (!%p1189_p10), 261120   ;;  %v1815_v0 = vshrl.u32 (!%p1189_p10), %v1814_v63, 7  ;;  %v1812_v4 = vld [vmem:[%s3655_s8] sm:$0x3] (!%p1189_p10) }
 0x31a   : > { %1946 = vmatpush1.bf16.msra.mxu0 (!%p1189_p10), %v2985_v42  ;;  %2859 = vmatpush1.bf16.msra.mxu1 (!%p1189_p10), %v2985_v42 }
 0x31b   : > { %1947 = vmatprep.subr.bf16.mxu0 (!%p1189_p10), %v2986_v43  ;;  %2858 = vmatprep.subr.bf16.mxu1 (!%p1189_p10), %v2986_v43  ;;  %v1816_v1 = vsub.s32 (!%p1189_p10), 0, %v1815_v0  ;;  %v1820_v5 = vsub.s32 (!%p1189_p10), 1, %v1815_v0 }
 0x31c   : > { %1861 = vxpose.xlu1.c.b16.end [2/2] (short) (!%p1189_p10), %v2980_v3, 128  ;;  %1845 = vxpose.xlu0.c.b16.end [2/2] (short) (!%p1189_p10), %v2982_v40, 128 }
 0x31d   : > { %v3532_v6 = vrot.slane %v1812_v4, %v1816_v1  ;;  %v3534_v7 = vrot.slane %v1812_v4, %v1820_v5 }
 0x31e   : > { %1948 = vmatpush1.bf16.msra.mxu0 %v2988_v44  ;;  %2860 = vmatpush1.bf16.msra.mxu1 %v2988_v44 }
 0x37e   : > { %v1868_v45 = vpop.trf.xlu1  ;;  %v1852_v46 = vpop.trf.xlu0 }
 0x37f   : > { %2693 = vmatmul.mubr.msk.bf16.vlgmr.msra.gmra.mrb[0].mxu1 %vm1896_vm1, %v1868_v45  ;;  %2685 = vmatmul.mubr.msk.bf16.vlgmr.msra.gmra.mrb[0].mxu0 %vm1896_vm1, %v1852_v46 }
 0x380   : > { %2067 = vmatprep.mubr.bf16.mxu1 %v3031_v39  ;;  %1987 = vmatprep.mubr.bf16.mxu0 %v3031_v39 }
 0x382   : > { %v1869_v47 = vpop.trf.xlu1  ;;  %v1853_v48 = vpop.trf.xlu0 }
 0x386   : > { %v1870_v49 = vpop.trf.xlu1  ;;  %v1854_v50 = vpop.trf.xlu0 }
 0x387   : > { %2694 = vmatmul.mubr.msk.bf16.gmra.mrb[4].mxu1 %vm1896_vm1, %v1869_v47  ;;  %2686 = vmatmul.mubr.msk.bf16.gmra.mrb[4].mxu0 %vm1896_vm1, %v1853_v48 }
 0x388   : > { %2077 = vmatprep.mubr.bf16.mxu1 %v3031_v39  ;;  %1997 = vmatprep.mubr.bf16.mxu0 %v3031_v39 }
 0x38a   : > { %v1871_v51 = vpop.trf.xlu1  ;;  %v1855_v52 = vpop.trf.xlu0 }
 0x38e   : > { %v1872_v53 = vpop.trf.xlu1  ;;  %v1856_v56 = vpop.trf.xlu0 }
 0x38f   : > { %2695 = vmatmul.mubr.msk.bf16.gmra.mrb[8].mxu1 %vm1896_vm1, %v1870_v49  ;;  %2687 = vmatmul.mubr.msk.bf16.gmra.mrb[8].mxu0 %vm1896_vm1, %v1854_v50 }
 0x390   : > { %2087 = vmatprep.mubr.bf16.mxu1 %v3031_v39  ;;  %2007 = vmatprep.mubr.bf16.mxu0 %v3031_v39 }
 0x392   : > { %v1873_v57 = vpop.trf.xlu1  ;;  %v1857_v58 = vpop.trf.xlu0 }
 0x396   : > { %v1874_v59 = vpop.trf.xlu1  ;;  %v1858_v60 = vpop.trf.xlu0 }
 0x397   : > { %2696 = vmatmul.mubr.msk.bf16.gmra.mrb[12].mxu1 %vm1896_vm1, %v1871_v51  ;;  %2688 = vmatmul.mubr.msk.bf16.gmra.mrb[12].mxu0 %vm1896_vm1, %v1855_v52 }
 0x398   : > { %2097 = vmatprep.mubr.bf16.mxu1 %v3031_v39  ;;  %2017 = vmatprep.mubr.bf16.mxu0 %v3031_v39 }
 0x39a   : > { %v1875_v61 = vpop.trf.xlu1  ;;  %v1859_v62 = vpop.trf.xlu0 }
 0x39f   : > { %2697 = vmatmul.mubr.msk.bf16.gmra.mrb[16].mxu1 %vm1896_vm1, %v1872_v53  ;;  %2689 = vmatmul.mubr.msk.bf16.gmra.mrb[16].mxu0 %vm1896_vm1, %v1856_v56 }
 0x3a0   : > { %2107 = vmatprep.mubr.bf16.mxu1 %v3031_v39  ;;  %2027 = vmatprep.mubr.bf16.mxu0 %v3031_v39 }
 0x3a7   : > { %2698 = vmatmul.mubr.msk.bf16.gmra.mrb[20].mxu1 %vm1896_vm1, %v1873_v57  ;;  %2690 = vmatmul.mubr.msk.bf16.gmra.mrb[20].mxu0 %vm1896_vm1, %v1857_v58 }
 0x3a8   : > { %2117 = vmatprep.mubr.bf16.mxu1 %v3031_v39  ;;  %2037 = vmatprep.mubr.bf16.mxu0 %v3031_v39 }
 0x3af   : > { %2699 = vmatmul.mubr.msk.bf16.gmra.mrb[24].mxu1 %vm1896_vm1, %v1874_v59  ;;  %2691 = vmatmul.mubr.msk.bf16.gmra.mrb[24].mxu0 %vm1896_vm1, %v1858_v60 }
 0x3b0   : > { %2127 = vmatprep.mubr.bf16.mxu1 %v3031_v39  ;;  %2047 = vmatprep.mubr.bf16.mxu0 %v3031_v39 }
 0x3b7   : > { %2700 = vmatmul.mubr.msk.bf16.gmra.mrb[28].mxu1 %vm1896_vm1, %v1875_v61  ;;  %2692 = vmatmul.mubr.msk.bf16.gmra.mrb[28].mxu0 %vm1896_vm1, %v1859_v62 }
 0x452   : > { %v2059_v8 = vpop.f32.mrb[0].mxu1  ;;  %v1979_v9 = vpop.f32.mrb[0].mxu0 }
 0x453   : > { %v2060_v10 = vadd.f32 %v2059_v8, %v3532_v6  ;;  %v2061_v11 = vpop.f32.mrb[1].mxu1  ;;  %v1980_v12 = vadd.f32 %v1979_v9, %v3532_v6  ;;  %v1981_v13 = vpop.f32.mrb[1].mxu0 }
 0x454   : > { %v2062_v14 = vadd.f32 %v2061_v11, %v3534_v7  ;;  %v2063_v15 = vpop.f32.mrb[2].mxu1  ;;  %v1982_v16 = vadd.f32 %v1981_v13, %v3534_v7  ;;  %v1983_v17 = vpop.f32.mrb[2].mxu0 }
 0x455   : > { %v2064_v18 = vadd.f32 %v2063_v15, %v3532_v6  ;;  %v2065_v19 = vpop.f32.mrb[3].mxu1  ;;  %v1984_v21 = vadd.f32 %v1983_v17, %v3532_v6  ;;  %v1985_v22 = vpop.f32.mrb[3].mxu0 }
 0x456   : > { %v2817_v20 = vpack.c.bf16 %v2062_v14, %v2060_v10  ;;  %v2066_v23 = vadd.f32 %v2065_v19, %v3534_v7  ;;  %v2801_v24 = vpack.c.bf16 %v1982_v16, %v1980_v12  ;;  %v1986_v25 = vadd.f32 %v1985_v22, %v3534_v7 }
 0x458   : > { %2346 = vst [vmem:[%s3135_s13 + $0x80] sm:$0xff] %v2817_v20  ;;  %v2818_v26 = vpack.c.bf16 %v2066_v23, %v2064_v18  ;;  %2330 = vst [vmem:[%s3135_s13] sm:$0xff] %v2801_v24  ;;  %v2802_v27 = vpack.c.bf16 %v1986_v25, %v1984_v21 }
 0x45a   : > { %2347 = vst [vmem:[%s3135_s13 + $0x88] sm:$0xff] %v2818_v26  ;;  %v2069_v54 = vpop.f32.mrb[4].mxu1  ;;  %2331 = vst [vmem:[%s3135_s13 + $0x8] sm:$0xff] %v2802_v27  ;;  %v1989_v55 = vpop.f32.mrb[4].mxu0 }
 0x45b   : > { %v2070_v28 = vadd.f32 %v2069_v54, %v3532_v6  ;;  %v2071_v29 = vpop.f32.mrb[5].mxu1  ;;  %v1990_v30 = vadd.f32 %v1989_v55, %v3532_v6  ;;  %v1991_v31 = vpop.f32.mrb[5].mxu0 }
 0x45c   : > { %v2072_v32 = vadd.f32 %v2071_v29, %v3534_v7  ;;  %v2073_v33 = vpop.f32.mrb[6].mxu1  ;;  %v1992_v34 = vadd.f32 %v1991_v31, %v3534_v7  ;;  %v1993_v35 = vpop.f32.mrb[6].mxu0 }
 0x45d   : > { %v2074_v36 = vadd.f32 %v2073_v33, %v3532_v6  ;;  %v2075_v37 = vpop.f32.mrb[7].mxu1  ;;  %v1994_v38 = vadd.f32 %v1993_v35, %v3532_v6  ;;  %v1995_v39 = vpop.f32.mrb[7].mxu0 }
 0x45e   : > { %v2819_v2 = vpack.c.bf16 %v2072_v32, %v2070_v28  ;;  %v2076_v3 = vadd.f32 %v2075_v37, %v3534_v7  ;;  %v2803_v40 = vpack.c.bf16 %v1992_v34, %v1990_v30  ;;  %v1996_v41 = vadd.f32 %v1995_v39, %v3534_v7 }
 0x460   : > { %2348 = vst [vmem:[%s3135_s13 + $0x90] sm:$0xff] %v2819_v2  ;;  %v2820_v42 = vpack.c.bf16 %v2076_v3, %v2074_v36  ;;  %2332 = vst [vmem:[%s3135_s13 + $0x10] sm:$0xff] %v2803_v40  ;;  %v2804_v43 = vpack.c.bf16 %v1996_v41, %v1994_v38 }
 0x462   : > { %2349 = vst [vmem:[%s3135_s13 + $0x98] sm:$0xff] %v2820_v42  ;;  %v2079_v44 = vpop.f32.mrb[8].mxu1  ;;  %2333 = vst [vmem:[%s3135_s13 + $0x18] sm:$0xff] %v2804_v43  ;;  %v1999_v45 = vpop.f32.mrb[8].mxu0 }
 0x463   : > { %v2080_v46 = vadd.f32 %v2079_v44, %v3532_v6  ;;  %v2081_v47 = vpop.f32.mrb[9].mxu1  ;;  %v2000_v48 = vadd.f32 %v1999_v45, %v3532_v6  ;;  %v2001_v49 = vpop.f32.mrb[9].mxu0 }
 0x464   : > { %v2082_v50 = vadd.f32 %v2081_v47, %v3534_v7  ;;  %v2083_v51 = vpop.f32.mrb[10].mxu1  ;;  %v2002_v52 = vadd.f32 %v2001_v49, %v3534_v7  ;;  %v2003_v53 = vpop.f32.mrb[10].mxu0 }
 0x465   : > { %v2084_v56 = vadd.f32 %v2083_v51, %v3532_v6  ;;  %v2085_v57 = vpop.f32.mrb[11].mxu1  ;;  %v2004_v59 = vadd.f32 %v2003_v53, %v3532_v6  ;;  %v2005_v60 = vpop.f32.mrb[11].mxu0 }
 0x466   : > { %v2821_v58 = vpack.c.bf16 %v2082_v50, %v2080_v46  ;;  %v2086_v61 = vadd.f32 %v2085_v57, %v3534_v7  ;;  %v2805_v62 = vpack.c.bf16 %v2002_v52, %v2000_v48  ;;  %v2006_v63 = vadd.f32 %v2005_v60, %v3534_v7 }
 0x468   : > { %2350 = vst [vmem:[%s3135_s13 + $0xa0] sm:$0xff] %v2821_v58  ;;  %v2822_v0 = vpack.c.bf16 %v2086_v61, %v2084_v56  ;;  %2334 = vst [vmem:[%s3135_s13 + $0x20] sm:$0xff] %v2805_v62  ;;  %v2806_v1 = vpack.c.bf16 %v2006_v63, %v2004_v59 }
 0x46a   : > { %2351 = vst [vmem:[%s3135_s13 + $0xa8] sm:$0xff] %v2822_v0  ;;  %v2089_v4 = vpop.f32.mrb[12].mxu1  ;;  %2335 = vst [vmem:[%s3135_s13 + $0x28] sm:$0xff] %v2806_v1  ;;  %v2009_v5 = vpop.f32.mrb[12].mxu0 }
 0x46b   : > { %v2090_v8 = vadd.f32 %v2089_v4, %v3532_v6  ;;  %v2091_v9 = vpop.f32.mrb[13].mxu1  ;;  %v2010_v10 = vadd.f32 %v2009_v5, %v3532_v6  ;;  %v2011_v11 = vpop.f32.mrb[13].mxu0 }
 0x46c   : > { %v2092_v12 = vadd.f32 %v2091_v9, %v3534_v7  ;;  %v2093_v13 = vpop.f32.mrb[14].mxu1  ;;  %v2012_v14 = vadd.f32 %v2011_v11, %v3534_v7  ;;  %v2013_v15 = vpop.f32.mrb[14].mxu0 }
 0x46d   : > { %v2094_v16 = vadd.f32 %v2093_v13, %v3532_v6  ;;  %v2095_v17 = vpop.f32.mrb[15].mxu1  ;;  %v2014_v19 = vadd.f32 %v2013_v15, %v3532_v6  ;;  %v2015_v20 = vpop.f32.mrb[15].mxu0 }
 0x46e   : > { %v2823_v18 = vpack.c.bf16 %v2092_v12, %v2090_v8  ;;  %v2096_v21 = vadd.f32 %v2095_v17, %v3534_v7  ;;  %v2807_v22 = vpack.c.bf16 %v2012_v14, %v2010_v10  ;;  %v2016_v23 = vadd.f32 %v2015_v20, %v3534_v7 }
 0x470   : > { %2352 = vst [vmem:[%s3135_s13 + $0xb0] sm:$0xff] %v2823_v18  ;;  %v2824_v24 = vpack.c.bf16 %v2096_v21, %v2094_v16  ;;  %2336 = vst [vmem:[%s3135_s13 + $0x30] sm:$0xff] %v2807_v22  ;;  %v2808_v25 = vpack.c.bf16 %v2016_v23, %v2014_v19 }
 0x472   : > { %2353 = vst [vmem:[%s3135_s13 + $0xb8] sm:$0xff] %v2824_v24  ;;  %v2099_v26 = vpop.f32.mrb[16].mxu1  ;;  %2337 = vst [vmem:[%s3135_s13 + $0x38] sm:$0xff] %v2808_v25  ;;  %v2019_v27 = vpop.f32.mrb[16].mxu0 }
 0x473   : > { %v2100_v54 = vadd.f32 %v2099_v26, %v3532_v6  ;;  %v2101_v55 = vpop.f32.mrb[17].mxu1  ;;  %v2020_v28 = vadd.f32 %v2019_v27, %v3532_v6  ;;  %v2021_v29 = vpop.f32.mrb[17].mxu0 }
 0x474   : > { %v2102_v30 = vadd.f32 %v2101_v55, %v3534_v7  ;;  %v2103_v31 = vpop.f32.mrb[18].mxu1  ;;  %v2022_v32 = vadd.f32 %v2021_v29, %v3534_v7  ;;  %v2023_v33 = vpop.f32.mrb[18].mxu0 }
 0x475   : > { %v2104_v34 = vadd.f32 %v2103_v31, %v3532_v6  ;;  %v2105_v35 = vpop.f32.mrb[19].mxu1  ;;  %v2024_v37 = vadd.f32 %v2023_v33, %v3532_v6  ;;  %v2025_v2 = vpop.f32.mrb[19].mxu0 }
 0x476   : > { %v2825_v36 = vpack.c.bf16 %v2102_v30, %v2100_v54  ;;  %v2106_v38 = vadd.f32 %v2105_v35, %v3534_v7  ;;  %v2809_v39 = vpack.c.bf16 %v2022_v32, %v2020_v28  ;;  %v2026_v3 = vadd.f32 %v2025_v2, %v3534_v7 }
 0x478   : > { %2354 = vst [vmem:[%s3135_s13 + $0xc0] sm:$0xff] %v2825_v36  ;;  %v2826_v40 = vpack.c.bf16 %v2106_v38, %v2104_v34  ;;  %2338 = vst [vmem:[%s3135_s13 + $0x40] sm:$0xff] %v2809_v39  ;;  %v2810_v41 = vpack.c.bf16 %v2026_v3, %v2024_v37 }
 0x47a   : > { %2355 = vst [vmem:[%s3135_s13 + $0xc8] sm:$0xff] %v2826_v40  ;;  %v2109_v42 = vpop.f32.mrb[20].mxu1  ;;  %2339 = vst [vmem:[%s3135_s13 + $0x48] sm:$0xff] %v2810_v41  ;;  %v2029_v43 = vpop.f32.mrb[20].mxu0 }
 0x47b   : > { %v2110_v44 = vadd.f32 %v2109_v42, %v3532_v6  ;;  %v2111_v45 = vpop.f32.mrb[21].mxu1  ;;  %v2030_v46 = vadd.f32 %v2029_v43, %v3532_v6  ;;  %v2031_v47 = vpop.f32.mrb[21].mxu0 }
 0x47c   : > { %v2112_v48 = vadd.f32 %v2111_v45, %v3534_v7  ;;  %v2113_v49 = vpop.f32.mrb[22].mxu1  ;;  %v2032_v50 = vadd.f32 %v2031_v47, %v3534_v7  ;;  %v2033_v51 = vpop.f32.mrb[22].mxu0 }
 0x47d   : > { %v2114_v52 = vadd.f32 %v2113_v49, %v3532_v6  ;;  %v2115_v53 = vpop.f32.mrb[23].mxu1  ;;  %v2034_v57 = vadd.f32 %v2033_v51, %v3532_v6  ;;  %v2035_v58 = vpop.f32.mrb[23].mxu0 }
 0x47e   : > { %v2827_v56 = vpack.c.bf16 %v2112_v48, %v2110_v44  ;;  %v2116_v59 = vadd.f32 %v2115_v53, %v3534_v7  ;;  %v2811_v60 = vpack.c.bf16 %v2032_v50, %v2030_v46  ;;  %v2036_v61 = vadd.f32 %v2035_v58, %v3534_v7 }
 0x480   : > { %2356 = vst [vmem:[%s3135_s13 + $0xd0] sm:$0xff] %v2827_v56  ;;  %v2828_v62 = vpack.c.bf16 %v2116_v59, %v2114_v52  ;;  %2340 = vst [vmem:[%s3135_s13 + $0x50] sm:$0xff] %v2811_v60  ;;  %v2812_v63 = vpack.c.bf16 %v2036_v61, %v2034_v57 }
 0x482   : > { %2357 = vst [vmem:[%s3135_s13 + $0xd8] sm:$0xff] %v2828_v62  ;;  %v2119_v0 = vpop.f32.mrb[24].mxu1  ;;  %2341 = vst [vmem:[%s3135_s13 + $0x58] sm:$0xff] %v2812_v63  ;;  %v2039_v1 = vpop.f32.mrb[24].mxu0 }
 0x483   : > { %v2120_v4 = vadd.f32 %v2119_v0, %v3532_v6  ;;  %v2121_v5 = vpop.f32.mrb[25].mxu1  ;;  %v2040_v8 = vadd.f32 %v2039_v1, %v3532_v6  ;;  %v2041_v9 = vpop.f32.mrb[25].mxu0 }
 0x484   : > { %v2122_v10 = vadd.f32 %v2121_v5, %v3534_v7  ;;  %v2123_v11 = vpop.f32.mrb[26].mxu1  ;;  %v2042_v12 = vadd.f32 %v2041_v9, %v3534_v7  ;;  %v2043_v13 = vpop.f32.mrb[26].mxu0 }
 0x485   : > { %v2124_v14 = vadd.f32 %v2123_v11, %v3532_v6  ;;  %v2125_v15 = vpop.f32.mrb[27].mxu1  ;;  %v2044_v17 = vadd.f32 %v2043_v13, %v3532_v6  ;;  %v2045_v18 = vpop.f32.mrb[27].mxu0 }
 0x486   : > { %v2829_v16 = vpack.c.bf16 %v2122_v10, %v2120_v4  ;;  %v2126_v19 = vadd.f32 %v2125_v15, %v3534_v7  ;;  %v2813_v20 = vpack.c.bf16 %v2042_v12, %v2040_v8  ;;  %v2046_v21 = vadd.f32 %v2045_v18, %v3534_v7 }
 0x488   : > { %2358 = vst [vmem:[%s3135_s13 + $0xe0] sm:$0xff] %v2829_v16  ;;  %v2830_v22 = vpack.c.bf16 %v2126_v19, %v2124_v14  ;;  %2342 = vst [vmem:[%s3135_s13 + $0x60] sm:$0xff] %v2813_v20  ;;  %v2814_v23 = vpack.c.bf16 %v2046_v21, %v2044_v17 }
 0x48a   : > { %2359 = vst [vmem:[%s3135_s13 + $0xe8] sm:$0xff] %v2830_v22  ;;  %v2129_v24 = vpop.f32.mrb[28].mxu1  ;;  %2343 = vst [vmem:[%s3135_s13 + $0x68] sm:$0xff] %v2814_v23  ;;  %v2049_v25 = vpop.f32.mrb[28].mxu0 }
 0x48b   : > { %v2130_v26 = vadd.f32 %v2129_v24, %v3532_v6  ;;  %v2131_v27 = vpop.f32.mrb[29].mxu1  ;;  %v2050_v54 = vadd.f32 %v2049_v25, %v3532_v6  ;;  %v2051_v55 = vpop.f32.mrb[29].mxu0 }
 0x48c   : > { %v2132_v28 = vadd.f32 %v2131_v27, %v3534_v7  ;;  %v2133_v29 = vpop.f32.mrb[30].mxu1  ;;  %v2052_v30 = vadd.f32 %v2051_v55, %v3534_v7  ;;  %v2053_v31 = vpop.f32.mrb[30].mxu0 }
 0x48d   : > { %v2134_v32 = vadd.f32 %v2133_v29, %v3532_v6  ;;  %v2135_v33 = vpop.f32.mrb[31].mxu1  ;;  %v2054_v35 = vadd.f32 %v2053_v31, %v3532_v6  ;;  %v2055_v36 = vpop.f32.mrb[31].mxu0 }
 0x48e   : > { %v2831_v34 = vpack.c.bf16 %v2132_v28, %v2130_v26  ;;  %v2136_v37 = vadd.f32 %v2135_v33, %v3534_v7  ;;  %v2815_v2 = vpack.c.bf16 %v2052_v30, %v2050_v54  ;;  %v2056_v38 = vadd.f32 %v2055_v36, %v3534_v7 }
 0x490   : > { %2360 = vst [vmem:[%s3135_s13 + $0xf0] sm:$0xff] %v2831_v34  ;;  %v2832_v39 = vpack.c.bf16 %v2136_v37, %v2134_v32  ;;  %2344 = vst [vmem:[%s3135_s13 + $0x70] sm:$0xff] %v2815_v2  ;;  %v2816_v3 = vpack.c.bf16 %v2056_v38, %v2054_v35 }
 0x492   : > { %2361 = vst [vmem:[%s3135_s13 + $0xf8] sm:$0xff] %v2832_v39  ;;  %2345 = vst [vmem:[%s3135_s13 + $0x78] sm:$0xff] %v2816_v3 }
 0x493 PF: > { %s3667_s18 = sld [smem:[#allocation4_spill]]  ;;  %s3668_s30 = sld [smem:[#allocation2_spill]] }
 0x494   : > { %s3669_s10 = sld [smem:[#allocation3_spill]]  ;;  %s3670_s11 = sld [smem:[#allocation5_spill]] }
 0x495   : > { %s3671_s12 = sld [smem:[#allocation6_spill]] }
 0x499   : > { %s19_s13 = sadd.s32 1, %s3667_s18  }
 0x49a   : > { %p16_p12 = scmp.ge.s32.totalorder %s19_s13, 8  }
 0x49c   :  { %18 = sbr.rel (!%p16_p12) target bundleno = 3 (0x3), region = 104 }

</bundles_post_ra>
